<compile_context>
chip_gen: v7x
topology: tpu7x:2x2x1
jax: 0.10.0
libtpu: 0.0.40
codegen_flags: <defaults>
</compile_context>

<pallas_src>
import math

import jax
import jax.numpy as jnp
from jax.experimental import pallas as pl
from jax.experimental.pallas import tpu as pltpu

# ----------------------------------------------------------------------------
# Config (small, consistent with the module)
# ----------------------------------------------------------------------------
N_NODES  = 16     # spatial nodes  -> attention length L
T_STEPS  = 4      # time steps     -> batch B after swapaxes
D_IN     = 4
D_MODEL  = 32
DIM_K    = 8
DIM_V    = 8
N_HEADS  = 4
DIM_FC   = 64
N_LAYERS = 1
LN_EPS   = 1e-5
G_BATCH  = 8      # independent instances batched into ONE pallas_call

# MXU operand dtype (f32 accumulation everywhere). Set jnp.float32 to disable.
MXU_DTYPE = jnp.bfloat16

BL   = T_STEPS * N_NODES          # 64  activation-slab rows (batch-major: t*N+n)
HK   = N_HEADS * DIM_K            # 32
HV   = N_HEADS * DIM_V            # 32
QKVW = 2 * HK + HV                # 96
HBL  = N_HEADS * BL               # 256 lane-stacked key/value rows
OUT_LANES = 128                   # lane-dense padded output width

MAT_LANES = max(HBL, OUT_LANES, QKVW, DIM_FC, BL, 128)
VEC_LANES = max(HBL, OUT_LANES, QKVW, DIM_FC, 128)


def _r16(n):
    return ((n + 15) // 16) * 16


# --- bf16 "matrix" slab row layout (everything that feeds the MXU) -----------
M_PAGG  = 0
M_WEMB  = M_PAGG  + _r16(BL)
M_POUT  = M_WEMB  + _r16(D_IN)
M_WPROJ = M_POUT  + _r16(BL)
M_ONES  = M_WPROJ + _r16(D_MODEL)
M_LAYER = M_ONES  + _r16(HBL)
L_WQKV  = 0
L_WO    = L_WQKV + _r16(D_MODEL)
L_W1    = L_WO   + _r16(HV)
L_W2    = L_W1   + _r16(D_MODEL)
L_STRIDE = L_W2  + _r16(DIM_FC)
M_ROWS  = M_LAYER + N_LAYERS * L_STRIDE

# --- f32 "vector" slab row layout (VPU-side constants) ------------------------
V_BEMB   = 0                      # (1, D_MODEL)
V_BPROJ  = 1                      # (1, OUT_LANES), zero padded
V_HMASK  = 2                      # (N_HEADS, HK+HV) per-head column masks
V_MASKB  = 8                      # (BL, HBL) additive batch block-diagonal mask
V_LAYER  = V_MASKB + BL
VL_BQKV, VL_BO, VL_B1, VL_B2, VL_G1, VL_BE1, VL_G2, VL_BE2 = range(8)
VL_STRIDE = 8
V_ROWS   = V_LAYER + N_LAYERS * VL_STRIDE

assert V_HMASK + N_HEADS <= V_MASKB


# ----------------------------------------------------------------------------
# Fused Pallas kernel
# ----------------------------------------------------------------------------
def _layernorm(h, gamma, beta, inv_d):
    # Two-pass (centered) statistics; rsqrt lands on the EUP.
    mu = jnp.sum(h, axis=-1, keepdims=True) * inv_d
    c = h - mu
    var = jnp.sum(c * c, axis=-1, keepdims=True) * inv_d
    return c * jax.lax.rsqrt(var + LN_EPS) * gamma + beta


def _fused_forward_kernel(x_ref, mats_ref, vecs_ref, o_ref):
    """One SpatialTSFM forward on a VMEM-resident (BL, D_MODEL) slab.
    One grid step == one independent instance; weights/constants are resident."""
    f32 = jnp.float32
    mxu = MXU_DTYPE
    inv_d = 1.0 / D_MODEL
    norm_fact = 1.0 / math.sqrt(D_MODEL)

    # Constants hoisted out of the layer loop.
    mask_bias = vecs_ref[V_MASKB:V_MASKB + BL, :HBL]              # (64, 256) f32
    hmask     = vecs_ref[V_HMASK:V_HMASK + N_HEADS, :HK + HV]     # (4, 64)   f32
    ones_bd   = mats_ref[M_ONES:M_ONES + HBL, :HBL]               # (256,256) mxu

    # ---- SpatialEmbedding (+ folded (N,T)->(T,N) swapaxes) -------------------
    # TODO(synk): SpatialEmbedding's source is not provided; deterministic
    # GCN-style placeholder (sym-normalised adjacency aggregation + linear).
    x = x_ref[...]                                                # (64, 4) f32
    w_emb = mats_ref[M_WEMB:M_WEMB + D_IN, :D_MODEL]
    e = jnp.dot(x.astype(mxu), w_emb, preferred_element_type=f32)
    p_agg = mats_ref[M_PAGG:M_PAGG + BL, :BL]
    h = jnp.dot(p_agg, e.astype(mxu), preferred_element_type=f32)
    h = h + vecs_ref[V_BEMB:V_BEMB + 1, :D_MODEL]                 # (64, 32) f32

    for li in range(N_LAYERS):
        mr = M_LAYER + li * L_STRIDE
        vr = V_LAYER + li * VL_STRIDE

        wqkv = mats_ref[mr + L_WQKV: mr + L_WQKV + D_MODEL, :QKVW]
        wo   = mats_ref[mr + L_WO:   mr + L_WO + HV,        :D_MODEL]
        w1   = mats_ref[mr + L_W1:   mr + L_W1 + D_MODEL,   :DIM_FC]
        w2   = mats_ref[mr + L_W2:   mr + L_W2 + DIM_FC,    :D_MODEL]
        bqkv = vecs_ref[vr + VL_BQKV: vr + VL_BQKV + 1, :QKVW]
        bo   = vecs_ref[vr + VL_BO:   vr + VL_BO + 1,   :D_MODEL]
        b1   = vecs_ref[vr + VL_B1:   vr + VL_B1 + 1,   :DIM_FC]
        b2   = vecs_ref[vr + VL_B2:   vr + VL_B2 + 1,   :D_MODEL]
        g1   = vecs_ref[vr + VL_G1:   vr + VL_G1 + 1,   :D_MODEL]
        be1  = vecs_ref[vr + VL_BE1:  vr + VL_BE1 + 1,  :D_MODEL]
        g2   = vecs_ref[vr + VL_G2:   vr + VL_G2 + 1,   :D_MODEL]
        be2  = vecs_ref[vr + VL_BE2:  vr + VL_BE2 + 1,  :D_MODEL]

        # ---- MultiheadAttention(x, x): lane-stacked heads ---------------------
        qkv = jnp.dot(h.astype(mxu), wqkv, preferred_element_type=f32) + bqkv
        q  = qkv[:, :HK]                                          # (64, 32)
        kv = qkv[:, HK:]                                          # (64, 64)  K|V

        # Sublane-stack K|V once, masked per head with constant (1, hk+hv) rows,
        # so all heads' scores and outputs come from single MXU ops.
        kv_stack = jnp.concatenate(
            [kv * hmask[hh:hh + 1, :] for hh in range(N_HEADS)], axis=0)  # (256,64)
        k_stack = kv_stack[:, :HK].astype(mxu)                    # (256, 32)
        v_stack = kv_stack[:, HK:].astype(mxu)                    # (256, 32)

        # Lane-dense scores: S[q, h*BL+i] = <Q_h[q], K_h[i]>  -> (64, 256).
        s = jax.lax.dot_general(q.astype(mxu), k_stack,
                                (((1,), (1,)), ((), ())),
                                preferred_element_type=f32)
        s = s * norm_fact + mask_bias          # additive batch block-diag mask

        # Softmax: one global row max (shift-invariant per head); per-head
        # denominators broadcast in place via one MXU matmul against the
        # block-diagonal ones; reciprocal on the EUP + one Newton step.
        m = jnp.max(s, axis=-1, keepdims=True)
        p = jnp.exp(s - m)
        den = jnp.dot(p.astype(mxu), ones_bd, preferred_element_type=f32)
        inv = pl.reciprocal(den, approx=True)
        inv = inv * (2.0 - den * inv)
        p = p * inv

        # P @ V_stack directly yields the concatenated per-head output.
        attn = jnp.dot(p.astype(mxu), v_stack, preferred_element_type=f32)
        attn = jnp.dot(attn.astype(mxu), wo, preferred_element_type=f32) + bo

        # ---- residual + LayerNorm1 (dropout == identity in eval) --------------
        xn = _layernorm(h + attn, g1, be1, inv_d)

        # ---- FFN: Conv1d(k=1) -> ReLU -> Conv1d(k=1) (pointwise linears) ------
        y = jnp.dot(xn.astype(mxu), w1, preferred_element_type=f32) + b1
        y = jnp.maximum(y, 0.0)
        y = jnp.dot(y.astype(mxu), w2, preferred_element_type=f32) + b2

        # ---- residual + LayerNorm2 ---------------------------------------------
        h = _layernorm(xn + y, g2, be2, inv_d)

    # ---- output swapaxes (permutation matmul) first, then lane-dense projection
    p_out = mats_ref[M_POUT:M_POUT + BL, :BL]
    h_perm = jnp.dot(p_out, h.astype(mxu), preferred_element_type=f32)   # (64, 32)
    w_proj = mats_ref[M_WPROJ:M_WPROJ + D_MODEL, :OUT_LANES]             # (32, 128)
    out = jnp.dot(h_perm.astype(mxu), w_proj, preferred_element_type=f32)
    out = out + vecs_ref[V_BPROJ:V_BPROJ + 1, :OUT_LANES]
    o_ref[...] = out.astype(o_ref.dtype)                                 # (64, 128)


# ----------------------------------------------------------------------------
# Wrapper: one pallas_call; grid over independent instances
# ----------------------------------------------------------------------------
def spatial_tsfm_forward_batched(xs, packed):
    """xs: (G, N, T, d_in) -> (G, N, T, d_in).  One pallas_call; grid=(G,) is
    marked "parallel" (v7x's two TensorCores split it); the two constant slabs
    have constant index_maps so they are fetched once and stay VMEM-resident."""
    g, n, t, d_in = xs.shape
    assert (n, t, d_in) == (N_NODES, T_STEPS, D_IN)
    bl = n * t
    x_flat = xs.reshape(g * bl, d_in)            # free reshape, row = n*T + t

    out_flat = pl.pallas_call(
        _fused_forward_kernel,
        out_shape=jax.ShapeDtypeStruct((g * bl, OUT_LANES), xs.dtype),
        grid=(g,),
        in_specs=[
            pl.BlockSpec((bl, d_in), lambda i: (i, 0)),
            pl.BlockSpec((M_ROWS, MAT_LANES), lambda i: (0, 0)),
            pl.BlockSpec((V_ROWS, VEC_LANES), lambda i: (0, 0)),
        ],
        out_specs=pl.BlockSpec((bl, OUT_LANES), lambda i: (i, 0)),
        compiler_params=pltpu.CompilerParams(
            dimension_semantics=("parallel",)),
    )(x_flat, packed['mats'], packed['vecs'])

    # Kernel stores a full-lane (64, 128) block; take the d_in columns here.
    return out_flat[:, :d_in].reshape(g, n, t, d_in)


def spatial_tsfm_forward(x, packed):
    """Single-instance (N, T, d_in) convenience wrapper."""
    return spatial_tsfm_forward_batched(x[None], packed)[0]


# ----------------------------------------------------------------------------
# Parameter packing: TWO slabs (one bf16 MXU slab, one f32 vector slab)
# ----------------------------------------------------------------------------
def pack_params(params, edge_index, num_nodes, t_steps):
    f32 = jnp.float32

    # Sym-normalised adjacency with self loops (placeholder SpatialEmbedding).
    A = jnp.zeros((num_nodes, num_nodes), f32)
    A = A.at[edge_index[0], edge_index[1]].set(1.0)
    A = A + jnp.eye(num_nodes, dtype=f32)
    dinv = 1.0 / jnp.sqrt(jnp.sum(A, axis=1))
    A_hat = A * dinv[:, None] * dinv[None, :]

    eye_t = jnp.eye(t_steps, dtype=f32)
    eye_n = jnp.eye(num_nodes, dtype=f32)
    # P_agg[t*N+n, m*T+u] = A_hat[n,m]*(u==t): aggregation fused with swapaxes.
    p_agg = jnp.einsum('nm,tu->tnmu', A_hat, eye_t).reshape(BL, BL)
    # P_out[n*T+t, t*N+n] = 1: the final swapaxes as a permutation matmul.
    p_out = jnp.einsum('nm,tu->ntum', eye_n, eye_t).reshape(BL, BL)

    def put(slab, row, a):
        return slab.at[row:row + a.shape[0], :a.shape[1]].set(a)

    mats = jnp.zeros((M_ROWS, MAT_LANES), f32)
    mats = put(mats, M_PAGG, p_agg)
    mats = put(mats, M_WEMB, params['w_emb'])
    mats = put(mats, M_POUT, p_out)
    mats = put(mats, M_WPROJ, params['w_proj'])        # zero-padded to OUT_LANES
    mats = put(mats, M_ONES,
               jnp.kron(jnp.eye(N_HEADS, dtype=f32), jnp.ones((BL, BL), f32)))

    vecs = jnp.zeros((V_ROWS, VEC_LANES), f32)
    vecs = put(vecs, V_BEMB, params['b_emb'].reshape(1, -1))
    vecs = put(vecs, V_BPROJ, params['b_proj'])        # zero-padded to OUT_LANES
    # Per-head 0/1 masks over the concatenated K|V columns.
    col = jnp.arange(HK + HV)
    head_of_col = jnp.where(col < HK, col // DIM_K, (col - HK) // DIM_V)
    hmask = (head_of_col[None, :] == jnp.arange(N_HEADS)[:, None]).astype(f32)
    vecs = put(vecs, V_HMASK, hmask)
    # Additive batch block-diagonal mask for the lane-stacked (BL, H*BL) scores.
    qb = (jnp.arange(BL) // num_nodes)[:, None]
    kb = ((jnp.arange(HBL) % BL) // num_nodes)[None, :]
    vecs = put(vecs, V_MASKB, jnp.where(qb == kb, 0.0, -1e30).astype(f32))

    for li, lp in enumerate(params['layers']):
        (wq, bq, wk, bk, wv, bv, wo, bo, w1, b1, w2, b2, g1, be1, g2, be2) = lp
        mr = M_LAYER + li * L_STRIDE
        vr = V_LAYER + li * VL_STRIDE
        mats = put(mats, mr + L_WQKV, jnp.concatenate([wq, wk, wv], axis=1))
        mats = put(mats, mr + L_WO, wo)
        mats = put(mats, mr + L_W1, w1)
        mats = put(mats, mr + L_W2, w2)
        vecs = put(vecs, vr + VL_BQKV, jnp.concatenate([bq, bk, bv], axis=1))
        for r, v in ((VL_BO, bo), (VL_B1, b1), (VL_B2, b2), (VL_G1, g1),
                     (VL_BE1, be1), (VL_G2, g2), (VL_BE2, be2)):
            vecs = put(vecs, vr + r, v)

    return {'mats': mats.astype(MXU_DTYPE), 'vecs': vecs}


# ----------------------------------------------------------------------------
# Pure-JAX reference (same math, f32 HIGHEST) for verification
# ----------------------------------------------------------------------------
def spatial_embedding(x, edge_index, w_emb, b_emb, num_nodes):
    # TODO(synk): same GCN-style placeholder as the kernel (source unavailable).
    A = jnp.zeros((num_nodes, num_nodes), jnp.float32)
    A = A.at[edge_index[0], edge_index[1]].set(1.0)
    A = A + jnp.eye(num_nodes, dtype=jnp.float32)
    dinv = 1.0 / jnp.sqrt(jnp.sum(A, axis=1))
    A_hat = A * dinv[:, None] * dinv[None, :]
    agg = jnp.einsum('nm,mtd->ntd', A_hat, x, precision=jax.lax.Precision.HIGHEST)
    return jnp.einsum('ntd,de->nte', agg, w_emb,
                      precision=jax.lax.Precision.HIGHEST) + b_emb


def _ref_layer(h, lp):
    (wq, bq, wk, bk, wv, bv, wo, bo, w1, b1, w2, b2, g1, be1, g2, be2) = lp
    B, L, D = h.shape
    hp = jax.lax.Precision.HIGHEST
    nf = 1.0 / math.sqrt(D)
    q = jnp.einsum('bld,de->ble', h, wq, precision=hp) + bq
    k = jnp.einsum('bld,de->ble', h, wk, precision=hp) + bk
    v = jnp.einsum('bld,de->ble', h, wv, precision=hp) + bv
    q = q.reshape(B, L, N_HEADS, DIM_K)
    k = k.reshape(B, L, N_HEADS, DIM_K)
    v = v.reshape(B, L, N_HEADS, DIM_V)
    s = jnp.einsum('blhe,bshe->bhls', q, k, precision=hp) * nf
    s = s - jnp.max(s, axis=-1, keepdims=True)
    p = jnp.exp(s)
    p = p / jnp.sum(p, axis=-1, keepdims=True)
    o = jnp.einsum('bhls,bshd->blhd', p, v, precision=hp).reshape(B, L, -1)
    attn = jnp.einsum('ble,ed->bld', o, wo, precision=hp) + bo
    h1 = h + attn
    mu = jnp.mean(h1, -1, keepdims=True)
    var = jnp.mean((h1 - mu) ** 2, -1, keepdims=True)
    xn = (h1 - mu) / jnp.sqrt(var + LN_EPS) * g1 + be1
    y = jnp.maximum(jnp.einsum('bld,df->blf', xn, w1, precision=hp) + b1, 0.0)
    y = jnp.einsum('blf,fd->bld', y, w2, precision=hp) + b2
    h2 = xn + y
    mu2 = jnp.mean(h2, -1, keepdims=True)
    var2 = jnp.mean((h2 - mu2) ** 2, -1, keepdims=True)
    return (h2 - mu2) / jnp.sqrt(var2 + LN_EPS) * g2 + be2


def reference_forward(x, edge_index, params):
    hp = jax.lax.Precision.HIGHEST
    h = spatial_embedding(x, edge_index, params['w_emb'], params['b_emb'], x.shape[0])
    h = jnp.swapaxes(h, 0, 1)
    for lp in params['layers']:
        h = _ref_layer(h, lp)
    out = jnp.einsum('bld,de->ble', h, params['w_proj'], precision=hp) + params['b_proj']
    return jnp.swapaxes(out, 0, 1)


# ----------------------------------------------------------------------------
# Deterministic parameter init
# ----------------------------------------------------------------------------
def _dense(key, fan_in, fan_out, scale=0.05):
    kw, kb = jax.random.split(key)
    w = scale * jax.random.normal(kw, (fan_in, fan_out), jnp.float32)
    b = scale * jax.random.normal(kb, (1, fan_out), jnp.float32)
    return w, b


def init_params(key):
    keys = jax.random.split(key, 2 + N_LAYERS)
    w_emb, b_emb = _dense(keys[0], D_IN, D_MODEL)
    b_emb = b_emb.reshape(1, 1, D_MODEL)
    w_proj, b_proj = _dense(keys[1], D_MODEL, D_IN)

    layers = []
    for li in range(N_LAYERS):
        lk = jax.random.split(keys[2 + li], 8)
        wq, bq = _dense(lk[0], D_MODEL, DIM_K * N_HEADS)
        wk, bk = _dense(lk[1], D_MODEL, DIM_K * N_HEADS)
        wv, bv = _dense(lk[2], D_MODEL, DIM_V * N_HEADS)
        wo, bo = _dense(lk[3], DIM_V * N_HEADS, D_MODEL)
        w1, b1 = _dense(lk[4], D_MODEL, DIM_FC)     # Conv1d(d_model, dim_fc, 1)
        w2, b2 = _dense(lk[5], DIM_FC, D_MODEL)     # Conv1d(dim_fc, d_model, 1)
        g1 = jnp.ones((1, D_MODEL), jnp.float32)
        be1 = jnp.zeros((1, D_MODEL), jnp.float32)
        g2 = jnp.ones((1, D_MODEL), jnp.float32)
        be2 = jnp.zeros((1, D_MODEL), jnp.float32)
        layers.append((wq, bq, wk, bk, wv, bv, wo, bo,
                       w1, b1, w2, b2, g1, be1, g2, be2))

    return {'w_emb': w_emb, 'b_emb': b_emb,
            'w_proj': w_proj, 'b_proj': b_proj,
            'layers': layers}


# ----------------------------------------------------------------------------
if __name__ == "__main__":
    key = jax.random.PRNGKey(0)
    k_x, k_p = jax.random.split(key)

    # G independent instances batched into ONE pallas_call (amortises launch/DMA).
    xs = jax.random.normal(k_x, (G_BATCH, N_NODES, T_STEPS, D_IN), jnp.float32)

    # Deterministic ring graph as edge_index (2, E)
    src = jnp.arange(N_NODES, dtype=jnp.int32)
    dst = (src + 1) % N_NODES
    edge_index = jnp.stack([jnp.concatenate([src, dst]),
                            jnp.concatenate([dst, src])], axis=0)

    params = init_params(k_p)
    packed = pack_params(params, edge_index, N_NODES, T_STEPS)

    fwd = jax.jit(spatial_tsfm_forward_batched)
    out = jax.block_until_ready(fwd(xs, packed))
    assert out.shape == xs.shape, out.shape

    ref = jax.block_until_ready(
        jax.vmap(lambda xi: reference_forward(xi, edge_index, params))(xs))

    # bf16 MXU operands (f32 accumulation) vs. an f32/HIGHEST reference: allow a
    # correspondingly modest tolerance (tighten by flipping MXU_DTYPE to f32).
    tol = 2e-2 if MXU_DTYPE == jnp.bfloat16 else 5e-3
    if not jnp.allclose(out, ref, atol=tol, rtol=tol):
        raise AssertionError(
            f"mismatch: max abs err {jnp.max(jnp.abs(out - ref)):.3e}")

    print("KERNEL_OK")
</pallas_src>

<mosaic_0001>
module attributes {stable_mosaic.version = 11 : i64} {
  func.func @_fused_forward_kernel(%arg0: i32, %arg1: memref<64x4xf32, #tpu.memory_space<vmem>>, %arg2: memref<592x256xbf16, #tpu.memory_space<vmem>>, %arg3: memref<80x256xf32, #tpu.memory_space<vmem>>, %arg4: memref<64x128xf32, #tpu.memory_space<vmem>>) attributes {dimension_semantics = [#tpu.dimension_semantics<parallel>], iteration_bounds = array<i64: 8>, scalar_prefetch = 0 : i64, scratch_operands = 0 : i64, tpu.core_type = #tpu.core_type<tc>, window_params = [{transform_indices = @transform_0, window_bounds = array<i64: 64, 4>}, {pipeline_mode = #tpu.pipeline_mode<synchronous>, transform_indices = @transform_1, window_bounds = array<i64: 592, 256>}, {pipeline_mode = #tpu.pipeline_mode<synchronous>, transform_indices = @transform_2, window_bounds = array<i64: 80, 256>}, {transform_indices = @transform_3, window_bounds = array<i64: 64, 128>}]} {
    %c8 = arith.constant 8 : index
    %c0 = arith.constant 0 : index
    %0 = vector.load %arg3[%c8, %c0] : memref<80x256xf32, #tpu.memory_space<vmem>>, vector<64x256xf32>
    %c2 = arith.constant 2 : index
    %c0_0 = arith.constant 0 : index
    %1 = vector.load %arg3[%c2, %c0_0] : memref<80x256xf32, #tpu.memory_space<vmem>>, vector<4x64xf32>
    %c176 = arith.constant 176 : index
    %c0_1 = arith.constant 0 : index
    %2 = vector.load %arg2[%c176, %c0_1] : memref<592x256xbf16, #tpu.memory_space<vmem>>, vector<256x256xbf16>
    %c0_2 = arith.constant 0 : index
    %c0_3 = arith.constant 0 : index
    %3 = vector.load %arg1[%c0_2, %c0_3] : memref<64x4xf32, #tpu.memory_space<vmem>>, vector<64x4xf32>
    %c64 = arith.constant 64 : index
    %c0_4 = arith.constant 0 : index
    %4 = vector.load %arg2[%c64, %c0_4] : memref<592x256xbf16, #tpu.memory_space<vmem>>, vector<4x32xbf16>
    %5 = arith.truncf %3 : vector<64x4xf32> to vector<64x4xbf16>
    %cst = arith.constant dense<0.000000e+00> : vector<64x32xf32>
    %6 = tpu.matmul %5, %4, %cst {dimension_numbers = #tpu.dot_dimension_numbers<[1], [0], [0], [1], [0, 0, 1, 1], [], []>} : vector<64x4xbf16>, vector<4x32xbf16>, vector<64x32xf32> -> vector<64x32xf32>
    %c0_5 = arith.constant 0 : index
    %c0_6 = arith.constant 0 : index
    %7 = vector.load %arg2[%c0_5, %c0_6] : memref<592x256xbf16, #tpu.memory_space<vmem>>, vector<64x64xbf16>
    %8 = arith.truncf %6 : vector<64x32xf32> to vector<64x32xbf16>
    %cst_7 = arith.constant dense<0.000000e+00> : vector<64x32xf32>
    %9 = tpu.matmul %7, %8, %cst_7 {dimension_numbers = #tpu.dot_dimension_numbers<[1], [0], [0], [1], [0, 0, 1, 1], [], []>} : vector<64x64xbf16>, vector<64x32xbf16>, vector<64x32xf32> -> vector<64x32xf32>
    %c0_8 = arith.constant 0 : index
    %c0_9 = arith.constant 0 : index
    %10 = vector.load %arg3[%c0_8, %c0_9] : memref<80x256xf32, #tpu.memory_space<vmem>>, vector<1x32xf32>
    %11 = vector.broadcast %10 : vector<1x32xf32> to vector<64x32xf32>
    %12 = arith.addf %9, %11 : vector<64x32xf32>
    %c432 = arith.constant 432 : index
    %c0_10 = arith.constant 0 : index
    %13 = vector.load %arg2[%c432, %c0_10] : memref<592x256xbf16, #tpu.memory_space<vmem>>, vector<32x96xbf16>
    %c464 = arith.constant 464 : index
    %c0_11 = arith.constant 0 : index
    %14 = vector.load %arg2[%c464, %c0_11] : memref<592x256xbf16, #tpu.memory_space<vmem>>, vector<32x32xbf16>
    %c496 = arith.constant 496 : index
    %c0_12 = arith.constant 0 : index
    %15 = vector.load %arg2[%c496, %c0_12] : memref<592x256xbf16, #tpu.memory_space<vmem>>, vector<32x64xbf16>
    %c528 = arith.constant 528 : index
    %c0_13 = arith.constant 0 : index
    %16 = vector.load %arg2[%c528, %c0_13] : memref<592x256xbf16, #tpu.memory_space<vmem>>, vector<64x32xbf16>
    %c72 = arith.constant 72 : index
    %c0_14 = arith.constant 0 : index
    %17 = vector.load %arg3[%c72, %c0_14] : memref<80x256xf32, #tpu.memory_space<vmem>>, vector<1x96xf32>
    %c73 = arith.constant 73 : index
    %c0_15 = arith.constant 0 : index
    %18 = vector.load %arg3[%c73, %c0_15] : memref<80x256xf32, #tpu.memory_space<vmem>>, vector<1x32xf32>
    %c74 = arith.constant 74 : index
    %c0_16 = arith.constant 0 : index
    %19 = vector.load %arg3[%c74, %c0_16] : memref<80x256xf32, #tpu.memory_space<vmem>>, vector<1x64xf32>
    %c75 = arith.constant 75 : index
    %c0_17 = arith.constant 0 : index
    %20 = vector.load %arg3[%c75, %c0_17] : memref<80x256xf32, #tpu.memory_space<vmem>>, vector<1x32xf32>
    %c76 = arith.constant 76 : index
    %c0_18 = arith.constant 0 : index
    %21 = vector.load %arg3[%c76, %c0_18] : memref<80x256xf32, #tpu.memory_space<vmem>>, vector<1x32xf32>
    %c77 = arith.constant 77 : index
    %c0_19 = arith.constant 0 : index
    %22 = vector.load %arg3[%c77, %c0_19] : memref<80x256xf32, #tpu.memory_space<vmem>>, vector<1x32xf32>
    %c78 = arith.constant 78 : index
    %c0_20 = arith.constant 0 : index
    %23 = vector.load %arg3[%c78, %c0_20] : memref<80x256xf32, #tpu.memory_space<vmem>>, vector<1x32xf32>
    %c79 = arith.constant 79 : index
    %c0_21 = arith.constant 0 : index
    %24 = vector.load %arg3[%c79, %c0_21] : memref<80x256xf32, #tpu.memory_space<vmem>>, vector<1x32xf32>
    %25 = arith.truncf %12 : vector<64x32xf32> to vector<64x32xbf16>
    %cst_22 = arith.constant dense<0.000000e+00> : vector<64x96xf32>
    %26 = tpu.matmul %25, %13, %cst_22 {dimension_numbers = #tpu.dot_dimension_numbers<[1], [0], [0], [1], [0, 0, 1, 1], [], []>} : vector<64x32xbf16>, vector<32x96xbf16>, vector<64x96xf32> -> vector<64x96xf32>
    %27 = vector.broadcast %17 : vector<1x96xf32> to vector<64x96xf32>
    %28 = arith.addf %26, %27 : vector<64x96xf32>
    %29 = vector.extract_strided_slice %28 {offsets = [0, 0], sizes = [64, 32], strides = [1, 1]} : vector<64x96xf32> to vector<64x32xf32>
    %30 = vector.extract_strided_slice %28 {offsets = [0, 32], sizes = [64, 64], strides = [1, 1]} : vector<64x96xf32> to vector<64x64xf32>
    %31 = vector.extract_strided_slice %1 {offsets = [0, 0], sizes = [1, 64], strides = [1, 1]} : vector<4x64xf32> to vector<1x64xf32>
    %32 = vector.broadcast %31 : vector<1x64xf32> to vector<64x64xf32>
    %33 = arith.mulf %30, %32 : vector<64x64xf32>
    %34 = vector.extract_strided_slice %1 {offsets = [1, 0], sizes = [1, 64], strides = [1, 1]} : vector<4x64xf32> to vector<1x64xf32>
    %35 = vector.broadcast %34 : vector<1x64xf32> to vector<64x64xf32>
    %36 = arith.mulf %30, %35 : vector<64x64xf32>
    %37 = vector.extract_strided_slice %1 {offsets = [2, 0], sizes = [1, 64], strides = [1, 1]} : vector<4x64xf32> to vector<1x64xf32>
    %38 = vector.broadcast %37 : vector<1x64xf32> to vector<64x64xf32>
    %39 = arith.mulf %30, %38 : vector<64x64xf32>
    %40 = vector.extract_strided_slice %1 {offsets = [3, 0], sizes = [1, 64], strides = [1, 1]} : vector<4x64xf32> to vector<1x64xf32>
    %41 = vector.broadcast %40 : vector<1x64xf32> to vector<64x64xf32>
    %42 = arith.mulf %30, %41 : vector<64x64xf32>
    %43 = tpu.concatenate %33, %36, %39, %42 in 0 : vector<64x64xf32>, vector<64x64xf32>, vector<64x64xf32>, vector<64x64xf32> -> vector<256x64xf32>
    %44 = vector.extract_strided_slice %43 {offsets = [0, 0], sizes = [256, 32], strides = [1, 1]} : vector<256x64xf32> to vector<256x32xf32>
    %45 = arith.truncf %44 : vector<256x32xf32> to vector<256x32xbf16>
    %46 = vector.extract_strided_slice %43 {offsets = [0, 32], sizes = [256, 32], strides = [1, 1]} : vector<256x64xf32> to vector<256x32xf32>
    %47 = arith.truncf %46 : vector<256x32xf32> to vector<256x32xbf16>
    %48 = arith.truncf %29 : vector<64x32xf32> to vector<64x32xbf16>
    %cst_23 = arith.constant dense<0.000000e+00> : vector<64x256xf32>
    %49 = tpu.matmul %48, %45, %cst_23 {dimension_numbers = #tpu.dot_dimension_numbers<[1], [1], [0], [0], [0, 0, 1, 0], [], []>} : vector<64x32xbf16>, vector<256x32xbf16>, vector<64x256xf32> -> vector<64x256xf32>
    %cst_24 = arith.constant 0.176776692 : f32
    %50 = vector.broadcast %cst_24 : f32 to vector<64x256xf32>
    %51 = arith.mulf %49, %50 : vector<64x256xf32>
    %52 = arith.addf %51, %0 : vector<64x256xf32>
    %cst_25 = arith.constant dense<0xFF800000> : vector<64xf32>
    %53 = vector.multi_reduction <maximumf>, %52, %cst_25 [1] : vector<64x256xf32> to vector<64xf32>
    %54 = vector.shape_cast %53 : vector<64xf32> to vector<64x1xf32>
    %55 = vector.broadcast %54 : vector<64x1xf32> to vector<64x256xf32>
    %56 = arith.subf %52, %55 : vector<64x256xf32>
    %57 = math.exp %56 : vector<64x256xf32>
    %58 = arith.truncf %57 : vector<64x256xf32> to vector<64x256xbf16>
    %cst_26 = arith.constant dense<0.000000e+00> : vector<64x256xf32>
    %59 = tpu.matmul %58, %2, %cst_26 {dimension_numbers = #tpu.dot_dimension_numbers<[1], [0], [0], [1], [0, 0, 1, 1], [], []>} : vector<64x256xbf16>, vector<256x256xbf16>, vector<64x256xf32> -> vector<64x256xf32>
    %60 = tpu.reciprocal %59 {approx = true} : vector<64x256xf32> -> vector<64x256xf32>
    %61 = arith.mulf %59, %60 : vector<64x256xf32>
    %cst_27 = arith.constant 2.000000e+00 : f32
    %62 = vector.broadcast %cst_27 : f32 to vector<64x256xf32>
    %63 = arith.subf %62, %61 : vector<64x256xf32>
    %64 = arith.mulf %60, %63 : vector<64x256xf32>
    %65 = arith.mulf %57, %64 : vector<64x256xf32>
    %66 = arith.truncf %65 : vector<64x256xf32> to vector<64x256xbf16>
    %cst_28 = arith.constant dense<0.000000e+00> : vector<64x32xf32>
    %67 = tpu.matmul %66, %47, %cst_28 {dimension_numbers = #tpu.dot_dimension_numbers<[1], [0], [0], [1], [0, 0, 1, 1], [], []>} : vector<64x256xbf16>, vector<256x32xbf16>, vector<64x32xf32> -> vector<64x32xf32>
    %68 = arith.truncf %67 : vector<64x32xf32> to vector<64x32xbf16>
    %cst_29 = arith.constant dense<0.000000e+00> : vector<64x32xf32>
    %69 = tpu.matmul %68, %14, %cst_29 {dimension_numbers = #tpu.dot_dimension_numbers<[1], [0], [0], [1], [0, 0, 1, 1], [], []>} : vector<64x32xbf16>, vector<32x32xbf16>, vector<64x32xf32> -> vector<64x32xf32>
    %70 = vector.broadcast %18 : vector<1x32xf32> to vector<64x32xf32>
    %71 = arith.addf %69, %70 : vector<64x32xf32>
    %72 = arith.addf %12, %71 : vector<64x32xf32>
    %cst_30 = arith.constant dense<0.000000e+00> : vector<64xf32>
    %73 = vector.multi_reduction <add>, %72, %cst_30 [1] : vector<64x32xf32> to vector<64xf32>
    %74 = vector.shape_cast %73 : vector<64xf32> to vector<64x1xf32>
    %cst_31 = arith.constant 3.125000e-02 : f32
    %75 = vector.broadcast %cst_31 : f32 to vector<64x1xf32>
    %76 = arith.mulf %74, %75 : vector<64x1xf32>
    %77 = vector.broadcast %76 : vector<64x1xf32> to vector<64x32xf32>
    %78 = arith.subf %72, %77 : vector<64x32xf32>
    %79 = arith.mulf %78, %78 : vector<64x32xf32>
    %cst_32 = arith.constant dense<0.000000e+00> : vector<64xf32>
    %80 = vector.multi_reduction <add>, %79, %cst_32 [1] : vector<64x32xf32> to vector<64xf32>
    %81 = vector.shape_cast %80 : vector<64xf32> to vector<64x1xf32>
    %cst_33 = arith.constant 3.125000e-02 : f32
    %82 = vector.broadcast %cst_33 : f32 to vector<64x1xf32>
    %83 = arith.mulf %81, %82 : vector<64x1xf32>
    %cst_34 = arith.constant 9.99999974E-6 : f32
    %84 = vector.broadcast %cst_34 : f32 to vector<64x1xf32>
    %85 = arith.addf %83, %84 : vector<64x1xf32>
    %86 = math.rsqrt %85 : vector<64x1xf32>
    %87 = vector.broadcast %86 : vector<64x1xf32> to vector<64x32xf32>
    %88 = arith.mulf %78, %87 : vector<64x32xf32>
    %89 = vector.broadcast %21 : vector<1x32xf32> to vector<64x32xf32>
    %90 = arith.mulf %88, %89 : vector<64x32xf32>
    %91 = vector.broadcast %22 : vector<1x32xf32> to vector<64x32xf32>
    %92 = arith.addf %90, %91 : vector<64x32xf32>
    %93 = arith.truncf %92 : vector<64x32xf32> to vector<64x32xbf16>
    %cst_35 = arith.constant dense<0.000000e+00> : vector<64x64xf32>
    %94 = tpu.matmul %93, %15, %cst_35 {dimension_numbers = #tpu.dot_dimension_numbers<[1], [0], [0], [1], [0, 0, 1, 1], [], []>} : vector<64x32xbf16>, vector<32x64xbf16>, vector<64x64xf32> -> vector<64x64xf32>
    %95 = vector.broadcast %19 : vector<1x64xf32> to vector<64x64xf32>
    %96 = arith.addf %94, %95 : vector<64x64xf32>
    %cst_36 = arith.constant 0.000000e+00 : f32
    %97 = vector.broadcast %cst_36 : f32 to vector<64x64xf32>
    %98 = arith.maximumf %96, %97 : vector<64x64xf32>
    %99 = arith.truncf %98 : vector<64x64xf32> to vector<64x64xbf16>
    %cst_37 = arith.constant dense<0.000000e+00> : vector<64x32xf32>
    %100 = tpu.matmul %99, %16, %cst_37 {dimension_numbers = #tpu.dot_dimension_numbers<[1], [0], [0], [1], [0, 0, 1, 1], [], []>} : vector<64x64xbf16>, vector<64x32xbf16>, vector<64x32xf32> -> vector<64x32xf32>
    %101 = vector.broadcast %20 : vector<1x32xf32> to vector<64x32xf32>
    %102 = arith.addf %100, %101 : vector<64x32xf32>
    %103 = arith.addf %92, %102 : vector<64x32xf32>
    %cst_38 = arith.constant dense<0.000000e+00> : vector<64xf32>
    %104 = vector.multi_reduction <add>, %103, %cst_38 [1] : vector<64x32xf32> to vector<64xf32>
    %105 = vector.shape_cast %104 : vector<64xf32> to vector<64x1xf32>
    %cst_39 = arith.constant 3.125000e-02 : f32
    %106 = vector.broadcast %cst_39 : f32 to vector<64x1xf32>
    %107 = arith.mulf %105, %106 : vector<64x1xf32>
    %108 = vector.broadcast %107 : vector<64x1xf32> to vector<64x32xf32>
    %109 = arith.subf %103, %108 : vector<64x32xf32>
    %110 = arith.mulf %109, %109 : vector<64x32xf32>
    %cst_40 = arith.constant dense<0.000000e+00> : vector<64xf32>
    %111 = vector.multi_reduction <add>, %110, %cst_40 [1] : vector<64x32xf32> to vector<64xf32>
    %112 = vector.shape_cast %111 : vector<64xf32> to vector<64x1xf32>
    %cst_41 = arith.constant 3.125000e-02 : f32
    %113 = vector.broadcast %cst_41 : f32 to vector<64x1xf32>
    %114 = arith.mulf %112, %113 : vector<64x1xf32>
    %cst_42 = arith.constant 9.99999974E-6 : f32
    %115 = vector.broadcast %cst_42 : f32 to vector<64x1xf32>
    %116 = arith.addf %114, %115 : vector<64x1xf32>
    %117 = math.rsqrt %116 : vector<64x1xf32>
    %118 = vector.broadcast %117 : vector<64x1xf32> to vector<64x32xf32>
    %119 = arith.mulf %109, %118 : vector<64x32xf32>
    %120 = vector.broadcast %23 : vector<1x32xf32> to vector<64x32xf32>
    %121 = arith.mulf %119, %120 : vector<64x32xf32>
    %122 = vector.broadcast %24 : vector<1x32xf32> to vector<64x32xf32>
    %123 = arith.addf %121, %122 : vector<64x32xf32>
    %c80 = arith.constant 80 : index
    %c0_43 = arith.constant 0 : index
    %124 = vector.load %arg2[%c80, %c0_43] : memref<592x256xbf16, #tpu.memory_space<vmem>>, vector<64x64xbf16>
    %125 = arith.truncf %123 : vector<64x32xf32> to vector<64x32xbf16>
    %cst_44 = arith.constant dense<0.000000e+00> : vector<64x32xf32>
    %126 = tpu.matmul %124, %125, %cst_44 {dimension_numbers = #tpu.dot_dimension_numbers<[1], [0], [0], [1], [0, 0, 1, 1], [], []>} : vector<64x64xbf16>, vector<64x32xbf16>, vector<64x32xf32> -> vector<64x32xf32>
    %c144 = arith.constant 144 : index
    %c0_45 = arith.constant 0 : index
    %127 = vector.load %arg2[%c144, %c0_45] : memref<592x256xbf16, #tpu.memory_space<vmem>>, vector<32x128xbf16>
    %128 = arith.truncf %126 : vector<64x32xf32> to vector<64x32xbf16>
    %cst_46 = arith.constant dense<0.000000e+00> : vector<64x128xf32>
    %129 = tpu.matmul %128, %127, %cst_46 {dimension_numbers = #tpu.dot_dimension_numbers<[1], [0], [0], [1], [0, 0, 1, 1], [], []>} : vector<64x32xbf16>, vector<32x128xbf16>, vector<64x128xf32> -> vector<64x128xf32>
    %c1 = arith.constant 1 : index
    %c0_47 = arith.constant 0 : index
    %130 = vector.load %arg3[%c1, %c0_47] : memref<80x256xf32, #tpu.memory_space<vmem>>, vector<1x128xf32>
    %131 = vector.broadcast %130 : vector<1x128xf32> to vector<64x128xf32>
    %132 = arith.addf %129, %131 : vector<64x128xf32>
    %c0_48 = arith.constant 0 : index
    %c0_49 = arith.constant 0 : index
    %133 = vector.load %arg4[%c0_48, %c0_49] : memref<64x128xf32, #tpu.memory_space<vmem>>, vector<64x128xf32>
    tpu.vector_store %arg4[%c0_48, %c0_49], %132 {strides = array<i32>} : memref<64x128xf32, #tpu.memory_space<vmem>>, vector<64x128xf32>,
    return
  }
  func.func @transform_0(%arg0: i32) -> (i32, i32) {
    %c0_i32 = arith.constant 0 : i32
    %c0_i32_0 = arith.constant 0 : i32
    return %arg0, %c0_i32 : i32, i32
  }
  func.func @transform_1(%arg0: i32) -> (i32, i32) {
    %c0_i32 = arith.constant 0 : i32
    %c0_i32_0 = arith.constant 0 : i32
    %c0_i32_1 = arith.constant 0 : i32
    return %c0_i32, %c0_i32_0 : i32, i32
  }
  func.func @transform_2(%arg0: i32) -> (i32, i32) {
    %c0_i32 = arith.constant 0 : i32
    %c0_i32_0 = arith.constant 0 : i32
    %c0_i32_1 = arith.constant 0 : i32
    return %c0_i32, %c0_i32_0 : i32, i32
  }
  func.func @transform_3(%arg0: i32) -> (i32, i32) {
    %c0_i32 = arith.constant 0 : i32
    %c0_i32_0 = arith.constant 0 : i32
    return %arg0, %c0_i32 : i32, i32
  }
}

</mosaic_0001>

<bundles_post_ra>
// kernel: spatial_tsfm_forward_batched.1
= control target key start
LH: loop header
LB: loop body
LE: loop exit
PB: predicated region body
PF: predicated region fallthrough
CT: control target
= control target key end

     0   :  { %8 = vsyncpa [#allocation3], 0  ;;  %s2807_s12 = smov 0   ;;  %s3506_s0 = inlined_call_operand.vmem [shape: f32[512,4], index: 0, kind: input, shape index: {}]   ;;  %s3507_s1 = inlined_call_operand.vmem [shape: bf16[592,256], index: 1, kind: input, shape index: {}]   ;;  %s3508_s2 = inlined_call_operand.hbm [shape: f32[80,256], index: 2, kind: input, shape index: {}]   ;;  %s3509_s3 = inlined_call_operand.vmem [shape: f32[512,128], index: 3, kind: output, shape index: {}]  }
   0x1 LB: > { %s2216_s13 = sadd.s32 4294967295, %s2779_s12   ;;  %p2218_p0 = scmp.ge.s32.totalorder %s2779_s12, 1  ;;  %s2779_s12 = sphi %s2807_s12, %s14_s12  }
   0x2   : > { %p113_p1 = scmp.lt.s32.totalorder %s2779_s12, 9  ;;  %s2781_s14 = smov [#allocation2]  }
   0x3   : > { %s128_s15 = sshll.u32 %s2781_s14, 4  ;;  %p2821_p3 = scmp.eq.s32.totalorder %s2216_s13, 0  ;;  %s129_s15 = int_to_ptr.vmem [resolvable:$true] %s128_s15 }
   0x4   : > { %p2815_p2 = pnand %p2218_p0, %p113_p1  ;;  %s2741_s21 = scalar_lea.hbm %s3508_s2, 2560 }
   0x5   : > { %s3514_s17 = scalar_select %p2821_p3, 1, 0 }
   0x6   : > { %s3513_s16 = scalar_select %p2815_p2, 1, 0 }
   0x7   : > { %p2557_p4 = pneg %p2815_p2  ;;  %p2742_p6 = scmp.ne.s32.totalorder %s3508_s2, %s2741_s21 }
   0x8   : > { %p2748_p10 = scmp.lt.u32.totalorder %s2741_s21, %s3508_s2 }
   0x9   : > { %p2829_p5 = pnand %p2821_p3, %p2557_p4 }
   0xb   : > { %p2743_p7 = pneg %p2829_p5 }
   0xd   : > { %p2744_p8 = pnand %p2743_p7, %p2742_p6 }
   0xf   : > { %p2745_p9 = pneg %p2744_p8 }
  0x11   : > { %p2750_p11 = pnand %p2748_p10, %p2745_p9 }
  0x13   : > { %2753 = shalt.err (!%p2750_p11)
}
  0x14   : > { %s2754_s26 = scalar_lea.vmem %s129_s15, 2560  ;;  %p2762_p1 = scmp.lt.s32.totalorder %s129_s15, %s129_s15 }
  0x15   : > { %p2755_p12 = scmp.ne.s32.totalorder %s129_s15, %s2754_s26  ;;  %p2763_p4 = scmp.lt.s32.totalorder %s2754_s26, %s2754_s26 }
  0x17   : > { %p2757_p13 = pnand %p2755_p12, %p2743_p7  ;;  %p2764_p3 = por %p2763_p4, %p2762_p1 }
  0x19   : > { %p2758_p0 = pneg %p2757_p13 }
  0x1b   : > { %p2765_p2 = pnand %p2764_p3, %p2758_p0 }
  0x1d   : > { %2768 = shalt.err (!%p2765_p2)
}
  0x1e   : > { %s2782_s27 = smov 256   ;;  %s2783_s28 = smov 16  }
  0x1f   : > { %2560 = dma.hbm_to_vmem [thread:$0]  (!%p2829_p5), %s3508_s2, 2560, %s129_s15, [#allocation3], %s2782_s27, %s2782_s27, %s2783_s28  }
  0x20   : > { %p3516_p6 = scmp.ne.s32.totalorder %s3513_s16, 0 }
  0x21   : > { %p3517_p8 = scmp.ne.s32.totalorder (!%p3516_p6), %s3514_s17, 0 }
  0x22   : > { %153 = sbr.rel (%p3516_p6) target bundleno = 3515 (0xdbb), region = 32 }
  0x29   : > { %2774 = dma.done.wait (%p3517_p8), [#allocation3], 2560  }
  0x2a   : > { %2776 = vsyncadd (%p3517_p8), [#allocation3], 4294964736  ;;  %s2223_s4 = sshll.u32 %s2216_s13, 3  ;;  %vm265_vm0 = vcmask 1041408   ;;  %v247_v0 = vld [vmem:[%s3507_s1 + $0x40] sm:$0x3]  ;;  %v567_v32 = vlaneseq }
  0x2b   : > { %p178_p2 = scmp.lt.s32.totalorder %s2223_s4, 63  ;;  %vm252_vm1 = vcmask 31744   ;;  %2544 = vmatprep.subr.msk.bf16.mxu0 %vm265_vm0, %v247_v0  ;;  %v267_v3 = vsel %vm265_vm0, %v247_v0, 0  ;;  %v2577_v14 = vld [vmem:[%s3507_s1] ss:$8 sps:$4 sm:$0xff]   ;;  %vm367_vm2 = vcmask 523264  }
  0x2c   : > { %2435 = vmatpush3.bf16.msra.mxu0 %v267_v3  ;;  %2452 = vmatprep.mubr.msk.bf16.mxu1 %vm367_vm2, %v2577_v14  ;;  %v2581_v15 = vld [vmem:[%s3507_s1 + $0x1b0] ss:$8 sps:$4 sm:$0xff]   ;;  %v2579_v29 = vld [vmem:[%s3507_s1 + $0x20] ss:$8 sps:$4 sm:$0xff]   ;;  %v568_v33 = vshrl.u32 %v567_v32, 7  ;;  %s2784_s24 = smov 32  }
  0x2d   : > { %s3519_s4 = smov (!%p178_p2, %s2223_s4), 63  ;;  %2460 = vmatprep.subr.bf16.mxu0 %v2581_v15  ;;  %v2578_v28 = vld [vmem:[%s3507_s1 + $0x10] ss:$8 sps:$4 sm:$0xff]   ;;  %v2582_v31 = vld [vmem:[%s3507_s1 + $0x1c0] ss:$8 sps:$4 sm:$0xff]   ;;  %vm489_vm3 = vcmask 261120  }
  0x2e   : > { %s2224_s5 = sshll.u32 %s3519_s4, 3  ;;  %v2580_v30 = vld [vmem:[%s3507_s1 + $0x30] ss:$8 sps:$4 sm:$0xff]   ;;  %v206_v34 = vld [vmem:[#allocation2] sm:$0x3c]  ;;  %v585_v35 = vsub.s32 3, %v568_v33 }
  0x2f   : > { %s181_s8 = scalar_lea.vmem %s3506_s0, %s2224_s5  ;;  %v569_v36 = vsub.s32 2, %v568_v33  ;;  %v617_v37 = vsub.s32 5, %v568_v33  ;;  %v601_v38 = vsub.s32 4, %v568_v33  ;;  %v346_v44 = vld [vmem:[#allocation2] ss:$0 sm:$0xff]  ;;  %s2785_s25 = smov 96  }
  0x30   : > { %v239_v1 = vld [vmem:[%s181_s8] sm:$0xff]  ;;  %v240_v2 = vld [vmem:[%s181_s8 + $0x8] sm:$0xff]  ;;  %v241_v5 = vld [vmem:[%s181_s8 + $0x10] sm:$0xff]  ;;  %v586_v39 = vrot.slane %v206_v34, %v585_v35  ;;  %s2786_s18 = smov 64  }
  0x31   : > { %v248_v4 = vpack.c.bf16 %v240_v2, %v239_v1  ;;  %v242_v6 = vld [vmem:[%s181_s8 + $0x18] sm:$0xff]  ;;  %v243_v7 = vld [vmem:[%s181_s8 + $0x20] sm:$0xff]  ;;  %v244_v9 = vld [vmem:[%s181_s8 + $0x28] sm:$0xff]  ;;  %v570_v40 = vrot.slane %v206_v34, %v569_v36  ;;  %v618_v41 = vrot.slane %v206_v34, %v617_v37  ;;  %v602_v42 = vrot.slane %v206_v34, %v601_v38 }
  0x32   : > { %v249_v8 = vpack.c.bf16 %v242_v6, %v241_v5  ;;  %v250_v10 = vpack.c.bf16 %v244_v9, %v243_v7  ;;  %v245_v11 = vld [vmem:[%s181_s8 + $0x30] sm:$0xff]  ;;  %v246_v12 = vld [vmem:[%s181_s8 + $0x38] sm:$0xff]  ;;  %588 = vrot.lane.b32.xlu1 %v586_v39, %s2784_s24 }
  0x33   : > { %2436 = vmatprep.mubr.msk.bf16.mxu0 %vm252_vm1, %v248_v4  ;;  %v251_v13 = vpack.c.bf16 %v246_v12, %v245_v11  ;;  %572 = vrot.lane.b32.xlu0 %v570_v40, %s2784_s24  ;;  %v465_v2 = vld [vmem:[#allocation2 + $0x90] ss:$0 sm:$0xff] }
  0x34   : > { %2437 = vmatmul.mubr.msk.bf16.vlgmr.msra.gmra.mrb[0].mxu0 %vm252_vm1, %v249_v8 }
  0x35   : > { %2440 = vmatprep.mubr.msk.bf16.mxu0 %vm252_vm1, %v250_v10  ;;  %2461 = vmatpush3.bf16.msra.mxu0 %v2581_v15 }
  0x36   : > { %2462 = vmatprep.subr.bf16.mxu0 %v2582_v31  ;;  %620 = vrot.lane.b32.xlu1 %v618_v41, %s2784_s24 }
  0x37   : > { %604 = vrot.lane.b32.xlu0 %v602_v42, %s2784_s24 }
  0x39   : > { %2463 = vmatpush3.bf16.msra.mxu0 %v2582_v31 }
  0x3c   : > { %2441 = vmatmul.mubr.msk.bf16.gmra.mrb[4].mxu0 %vm252_vm1, %v251_v13 }
  0xa4   : > { %v2922_v1 = vpop.permute.xlu1 %588 }
  0xa5   : > { %v573_v0 = vpop.permute.xlu0 %572 }
  0xa8   : > { %v2924_v9 = vpop.permute.xlu1 %620 }
  0xa9   : > { %v605_v4 = vpop.permute.xlu0 %604 }
 0x107   : > { %v2438_v16 = vpop.f32.mrb[0].mxu0 }
 0x108   : > { %v303_v17 = vpop.f32.mrb[1].mxu0 }
 0x109   : > { %v2439_v18 = vpop.f32.mrb[2].mxu0 }
 0x10a   : > { %v343_v19 = vpack.c.bf16 %v2439_v18, %v2438_v16  ;;  %v306_v20 = vpop.f32.mrb[3].mxu0 }
 0x10b   : > { %v342_v21 = vpack.c.bf16 %v306_v20, %v303_v17 }
 0x10d   : > { %2444 = vmatprep.subr.bf16.mxu1 %v342_v21 }
 0x10e   : > { %2445 = vmatpush3.bf16.msra.mxu1 %v342_v21 }
 0x10f   : > { %v2442_v22 = vpop.f32.mrb[4].mxu0  ;;  %2446 = vmatprep.subr.bf16.mxu1 %v343_v19 }
 0x110   : > { %v319_v23 = vpop.f32.mrb[5].mxu0 }
 0x111   : > { %v2443_v24 = vpop.f32.mrb[6].mxu0 }
 0x112   : > { %v345_v25 = vpack.c.bf16 %v2443_v24, %v2442_v22  ;;  %v322_v26 = vpop.f32.mrb[7].mxu0  ;;  %2447 = vmatpush3.bf16.msra.mxu1 %v343_v19 }
 0x113   : > { %v344_v27 = vpack.c.bf16 %v322_v26, %v319_v23 }
 0x115   : > { %2448 = vmatprep.subr.bf16.mxu1 %v344_v27 }
 0x116   : > { %2449 = vmatpush3.bf16.msra.mxu1 %v344_v27 }
 0x117   : > { %2450 = vmatprep.subr.bf16.mxu1 %v345_v25 }
 0x11a   : > { %2451 = vmatpush3.bf16.msra.mxu1 %v345_v25 }
 0x11d   : > { %2453 = vmatmul.mubr.msk.bf16.vlgmr.msra.gmra.mrb[0].mxu1 %vm367_vm2, %v2578_v28 }
 0x11e   : > { %2456 = vmatprep.mubr.msk.bf16.mxu1 %vm367_vm2, %v2579_v29 }
 0x125   : > { %2457 = vmatmul.mubr.msk.bf16.gmra.mrb[4].mxu1 %vm367_vm2, %v2580_v30 }
 0x1f0   : > { %v2454_v43 = vpop.f32.mrb[0].mxu1 }
 0x1f1   : > { %v414_v45 = vpop.f32.mrb[1].mxu1  ;;  %v2900_v51 = vadd.f32 %v2454_v43, %v346_v44 }
 0x1f2   : > { %v2455_v46 = vpop.f32.mrb[2].mxu1  ;;  %v2896_v49 = vadd.f32 %v414_v45, %v346_v44 }
 0x1f3   : > { %v2894_v47 = vadd.f32 %v2455_v46, %v346_v44  ;;  %v417_v48 = vpop.f32.mrb[3].mxu1 }
 0x1f4   : > { %v2898_v50 = vadd.f32 %v417_v48, %v346_v44 }
 0x1f5   : > { %v474_v53 = vpack.c.bf16 %v2894_v47, %v2900_v51 }
 0x1f6   : > { %v473_v52 = vpack.c.bf16 %v2898_v50, %v2896_v49 }
 0x1f8   : > { %v2458_v54 = vpop.f32.mrb[4].mxu1  ;;  %2464 = vmatprep.mubr.msk.bf16.mxu0 %vm489_vm3, %v473_v52 }
 0x1f9   : > { %v2907_v55 = vadd.f32 %v2458_v54, %v346_v44  ;;  %v430_v56 = vpop.f32.mrb[5].mxu1  ;;  %2465 = vmatmul.mubr.msk.bf16.vlgmr.msra.gmra.mrb[8].mxu0 %vm489_vm3, %v474_v53 }
 0x1fa   : > { %v2910_v57 = vadd.f32 %v430_v56, %v346_v44  ;;  %v2459_v58 = vpop.f32.mrb[6].mxu1 }
 0x1fb   : > { %v2912_v59 = vadd.f32 %v2459_v58, %v346_v44  ;;  %v433_v60 = vpop.f32.mrb[7].mxu1 }
 0x1fc   : > { %v2914_v61 = vadd.f32 %v433_v60, %v346_v44 }
 0x1fd   : > { %v476_v62 = vpack.c.bf16 %v2912_v59, %v2907_v55 }
 0x1fe   : > { %v475_v63 = vpack.c.bf16 %v2914_v61, %v2910_v57 }
 0x200   : > { %2468 = vmatprep.mubr.msk.bf16.mxu0 %vm489_vm3, %v475_v63 }
 0x201   : > { %2469 = vmatmul.mubr.msk.bf16.gmra.mrb[12].mxu0 %vm489_vm3, %v476_v62 }
 0x2cc   : > { %v2466_v3 = vpop.f32.mrb[8].mxu0 }
 0x2cd   : > { %v545_v5 = vadd.f32 %v2466_v3, %v465_v2  ;;  %v536_v6 = vpop.f32.mrb[9].mxu0 }
 0x2ce   : > { %v537_v7 = vadd.f32 %v536_v6, %v465_v2  ;;  %v2467_v8 = vpop.f32.mrb[10].mxu0 }
 0x2cf   : > { %v548_v10 = vadd.f32 %v2467_v8, %v465_v2  ;;  %v539_v11 = vpop.f32.mrb[11].mxu0  ;;  %v577_v12 = vmul.f32 %v573_v0, %v545_v5  ;;  %v609_v13 = vmul.f32 %v605_v4, %v545_v5  ;;  %v593_v14 = vmul.f32 %v2922_v1, %v545_v5 }
 0x2d0   : > { %v540_v15 = vadd.f32 %v539_v11, %v465_v2  ;;  %v575_v16 = vmul.f32 %v573_v0, %v537_v7  ;;  %v607_v17 = vmul.f32 %v605_v4, %v537_v7  ;;  %v591_v18 = vmul.f32 %v2922_v1, %v537_v7 }
 0x2d1   : > { %v578_v19 = vmul.f32 %v573_v0, %v548_v10  ;;  %v610_v20 = vmul.f32 %v605_v4, %v548_v10  ;;  %v623_v21 = vmul.f32 %v2924_v9, %v537_v7  ;;  %v594_v22 = vmul.f32 %v2922_v1, %v548_v10 }
 0x2d2   : > { %v2930_v23 = vpack.c.bf16 %v540_v15, %v537_v7  ;;  %v576_v24 = vmul.f32 %v573_v0, %v540_v15  ;;  %v608_v25 = vmul.f32 %v605_v4, %v540_v15  ;;  %v592_v26 = vmul.f32 %v2922_v1, %v540_v15 }
 0x2d3   : > { %v2933_v27 = vpack.c.bf16 %v578_v19, %v577_v12  ;;  %v2935_v28 = vpack.c.bf16 %v610_v20, %v609_v13  ;;  %v624_v29 = vmul.f32 %v2924_v9, %v540_v15  ;;  %v2938_v30 = vpack.c.bf16 %v594_v22, %v593_v14 }
 0x2d4   : > { %v2470_v31 = vpop.f32.mrb[12].mxu0  ;;  %2352 = vmatprep.mubr.msk.bf16.mxu1 %vm489_vm3, %v2930_v23  ;;  %v2942_v32 = vpack.c.bf16 %v576_v24, %v575_v16  ;;  %v2944_v33 = vpack.c.bf16 %v608_v25, %v607_v17  ;;  %v2946_v34 = vpack.c.bf16 %v592_v26, %v591_v18  ;;  %v625_v35 = vmul.f32 %v2924_v9, %v545_v5 }
 0x2d5   : > { %v561_v36 = vadd.f32 %v2470_v31, %v465_v2  ;;  %v552_v37 = vpop.f32.mrb[13].mxu0  ;;  %v2949_v38 = vpack.c.bf16 %v624_v29, %v623_v21  ;;  %v626_v39 = vmul.f32 %v2924_v9, %v548_v10  ;;  %v2952_v40 = vpack.c.bf16 %v548_v10, %v545_v5 }
 0x2d6   : > { %v553_v41 = vadd.f32 %v552_v37, %v465_v2  ;;  %v2471_v42 = vpop.f32.mrb[14].mxu0  ;;  %667 = vrot.lane.b32.xlu0 %v2942_v32, %s2785_s25  ;;  %683 = vrot.lane.b32.xlu1 %v2944_v33, %s2785_s25 }
 0x2d7   : > { %v564_v43 = vadd.f32 %v2471_v42, %v465_v2  ;;  %v555_v44 = vpop.f32.mrb[15].mxu0  ;;  %v581_v45 = vmul.f32 %v573_v0, %v561_v36  ;;  %v613_v46 = vmul.f32 %v605_v4, %v561_v36  ;;  %v2958_v48 = vpack.c.bf16 %v626_v39, %v625_v35 }
 0x2d8   : > { %v556_v52 = vadd.f32 %v555_v44, %v465_v2  ;;  %v579_v53 = vmul.f32 %v573_v0, %v553_v41  ;;  %v611_v54 = vmul.f32 %v605_v4, %v553_v41  ;;  %v595_v56 = vmul.f32 %v2922_v1, %v553_v41 }
 0x2d9   : > { %v582_v58 = vmul.f32 %v573_v0, %v564_v43  ;;  %v614_v60 = vmul.f32 %v605_v4, %v564_v43  ;;  %v627_v62 = vmul.f32 %v2924_v9, %v553_v41  ;;  %v597_v63 = vmul.f32 %v2922_v1, %v561_v36 }
 0x2da   : > { %669 = vrot.lane.b32.xlu0 %v2933_v27, %s2785_s25  ;;  %685 = vrot.lane.b32.xlu1 %v2935_v28, %s2785_s25  ;;  %v580_v3 = vmul.f32 %v573_v0, %v556_v52  ;;  %v612_v5 = vmul.f32 %v605_v4, %v556_v52  ;;  %v596_v2 = vmul.f32 %v2922_v1, %v556_v52 }
 0x2db   : > { %v2968_v6 = vpack.c.bf16 %v582_v58, %v581_v45  ;;  %v2970_v7 = vpack.c.bf16 %v614_v60, %v613_v46  ;;  %v628_v8 = vmul.f32 %v2924_v9, %v556_v52  ;;  %v598_v10 = vmul.f32 %v2922_v1, %v564_v43  ;;  %v2586_v58 = vld [vmem:[%s3507_s1 + $0xc0] ss:$8 sps:$4 sm:$0xff]   ;;  %v2591_v60 = vld [vmem:[%s3507_s1 + $0xd4] ss:$8 sps:$4 sm:$0xff]  }
 0x2dc   : > { %v2974_v11 = vpack.c.bf16 %v580_v3, %v579_v53  ;;  %v2976_v12 = vpack.c.bf16 %v612_v5, %v611_v54  ;;  %v2978_v13 = vpack.c.bf16 %v596_v2, %v595_v56  ;;  %v629_v14 = vmul.f32 %v2924_v9, %v561_v36  ;;  %v2583_v56 = vld [vmem:[%s3507_s1 + $0xb0] ss:$8 sps:$4 sm:$0xff]   ;;  %v2592_v3 = vld [vmem:[%s3507_s1 + $0xe0] ss:$8 sps:$4 sm:$0xff]   ;;  %v2597_v5 = vld [vmem:[%s3507_s1 + $0xf4] ss:$8 sps:$4 sm:$0xff]  }
 0x2dd   : > { %v2981_v0 = vpack.c.bf16 %v628_v8, %v627_v62  ;;  %v2983_v4 = vpack.c.bf16 %v598_v10, %v597_v63  ;;  %v630_v15 = vmul.f32 %v2924_v9, %v564_v43  ;;  %v649_v16 = vpack.c.bf16 %v556_v52, %v553_v41  ;;  %v2589_v62 = vld [vmem:[%s3507_s1 + $0xd0] ss:$8 sps:$4 sm:$0xff]   ;;  %v2594_v63 = vld [vmem:[%s3507_s1 + $0xe4] ss:$8 sps:$4 sm:$0xff]   ;;  %v2598_v10 = vld [vmem:[%s3507_s1 + $0x100] ss:$8 sps:$4 sm:$0xff]  }
 0x2de   : > { %671 = vrot.lane.b32.xlu0 %v2974_v11, %s2785_s25  ;;  %687 = vrot.lane.b32.xlu1 %v2976_v12, %s2785_s25  ;;  %v650_v1 = vpack.c.bf16 %v564_v43, %v561_v36  ;;  %v2595_v2 = vld [vmem:[%s3507_s1 + $0xf0] ss:$8 sps:$4 sm:$0xff]   ;;  %v2600_v8 = vld [vmem:[%s3507_s1 + $0x104] ss:$8 sps:$4 sm:$0xff]  }
 0x2df   : > { %v2990_v17 = vpack.c.bf16 %v630_v15, %v629_v14  ;;  %v2603_v14 = vld [vmem:[%s3507_s1 + $0x114] ss:$8 sps:$4 sm:$0xff]   ;;  %v2601_v15 = vld [vmem:[%s3507_s1 + $0x110] ss:$8 sps:$4 sm:$0xff]  }
 0x2e2   : > { %673 = vrot.lane.b32.xlu0 %v2968_v6, %s2785_s25  ;;  %689 = vrot.lane.b32.xlu1 %v2970_v7, %s2785_s25 }
 0x2e6   : > { %675 = vrot.lane.b32.xlu0 %v2946_v34, %s2785_s25  ;;  %691 = vrot.lane.b32.xlu1 %v2949_v38, %s2785_s25 }
 0x2ea   : > { %677 = vrot.lane.b32.xlu0 %v2938_v30, %s2785_s25  ;;  %693 = vrot.lane.b32.xlu1 %v2958_v48, %s2785_s25 }
 0x2ee   : > { %679 = vrot.lane.b32.xlu0 %v2978_v13, %s2785_s25  ;;  %695 = vrot.lane.b32.xlu1 %v2981_v0, %s2785_s25 }
 0x2f2   : > { %681 = vrot.lane.b32.xlu0 %v2983_v4, %s2785_s25  ;;  %697 = vrot.lane.b32.xlu1 %v2990_v17, %s2785_s25  ;;  %s187_s25 = scalar_lea.vmem %s3509_s3, %s2224_s5 }
 0x348   : > { %v684_v9 = vpop.permute.xlu1 %683  ;;  %v668_v18 = vpop.permute.xlu0 %667 }
 0x349   : > { %v712_v19 = vsel %vm489_vm3, %v668_v18, 0  ;;  %2545 = vmatprep.subr.msk.bf16.mxu1 %vm489_vm3, %v684_v9  ;;  %v2609_v9 = vld [vmem:[%s3507_s1 + $0x134] ss:$8 sps:$4 sm:$0xff]   ;;  %v2607_v18 = vld [vmem:[%s3507_s1 + $0x130] ss:$8 sps:$4 sm:$0xff]  }
 0x34a   : > { %2337 = vmatpush3.bf16.xpose.msra.mxu1 %v712_v19  ;;  %v2612_v19 = vld [vmem:[%s3507_s1 + $0x144] ss:$8 sps:$4 sm:$0xff]  }
 0x34c   : > { %v686_v20 = vpop.permute.xlu1 %685  ;;  %v670_v21 = vpop.permute.xlu0 %669 }
 0x34d   : > { %2546 = vmatprep.subr.msk.bf16.mxu1 %vm489_vm3, %v686_v20  ;;  %v715_v22 = vsel %vm489_vm3, %v670_v21, 0  ;;  %v2610_v20 = vld [vmem:[%s3507_s1 + $0x140] ss:$8 sps:$4 sm:$0xff]   ;;  %v2615_v21 = vld [vmem:[%s3507_s1 + $0x154] ss:$8 sps:$4 sm:$0xff]  }
 0x350   : > { %v688_v24 = vpop.permute.xlu1 %687  ;;  %v672_v25 = vpop.permute.xlu0 %671 }
 0x351   : > { %v718_v26 = vsel %vm489_vm3, %v672_v25, 0 }
 0x352   : > { %2339 = vmatpush3.bf16.xpose.msra.mxu1 %v715_v22  ;;  %v2613_v22 = vld [vmem:[%s3507_s1 + $0x150] ss:$8 sps:$4 sm:$0xff]  }
 0x353   : > { %2547 = vmatprep.subr.msk.bf16.mxu1 %vm489_vm3, %v688_v24  ;;  %v190_v24 = vld [vmem:[#allocation2 + $0x10] sm:$0xff] }
 0x354   : > { %v690_v29 = vpop.permute.xlu1 %689  ;;  %v674_v31 = vpop.permute.xlu0 %673 }
 0x355   : > { %v721_v35 = vsel %vm489_vm3, %v674_v31, 0 }
 0x358   : > { %v692_v36 = vpop.permute.xlu1 %691  ;;  %v676_v37 = vpop.permute.xlu0 %675 }
 0x359   : > { %v724_v39 = vsel %vm489_vm3, %v676_v37, 0 }
 0x35a   : > { %2341 = vmatpush3.bf16.xpose.msra.mxu1 %v718_v26 }
 0x35b   : > { %2548 = vmatprep.subr.msk.bf16.mxu1 %vm489_vm3, %v690_v29  ;;  %v191_v29 = vld [vmem:[#allocation2 + $0x18] sm:$0xff] }
 0x35c   : > { %v694_v41 = vpop.permute.xlu1 %693  ;;  %v678_v42 = vpop.permute.xlu0 %677 }
 0x35d   : > { %v727_v43 = vsel %vm489_vm3, %v678_v42, 0  ;;  %v193_v42 = vld [vmem:[#allocation2 + $0x28] sm:$0xff] }
 0x360   : > { %v696_v44 = vpop.permute.xlu1 %695  ;;  %v680_v45 = vpop.permute.xlu0 %679 }
 0x361   : > { %v730_v46 = vsel %vm489_vm3, %v680_v45, 0 }
 0x362   : > { %2343 = vmatpush3.bf16.xpose.msra.mxu1 %v721_v35 }
 0x363   : > { %2549 = vmatprep.subr.msk.bf16.mxu1 %vm489_vm3, %v692_v36  ;;  %v192_v36 = vld [vmem:[#allocation2 + $0x20] sm:$0xff] }
 0x364   : > { %v698_v52 = vpop.permute.xlu1 %697  ;;  %v682_v53 = vpop.permute.xlu0 %681 }
 0x365   : > { %v733_v54 = vsel %vm489_vm3, %v682_v53, 0 }
 0x36a   : > { %2345 = vmatpush3.bf16.xpose.msra.mxu1 %v724_v39 }
 0x36b   : > { %2550 = vmatprep.subr.msk.bf16.mxu1 %vm489_vm3, %v694_v41 }
 0x372   : > { %2347 = vmatpush3.bf16.xpose.msra.mxu1 %v727_v43 }
 0x373   : > { %2551 = vmatprep.subr.msk.bf16.mxu1 %vm489_vm3, %v696_v44 }
 0x37a   : > { %2349 = vmatpush3.bf16.xpose.msra.mxu1 %v730_v46 }
 0x37b   : > { %2552 = vmatprep.subr.msk.bf16.mxu1 %vm489_vm3, %v698_v52 }
 0x382   : > { %2351 = vmatpush3.bf16.xpose.msra.mxu1 %v733_v54  ;;  %v194_v54 = vld [vmem:[#allocation2 + $0x30] sm:$0xff] }
 0x389   : > { %2353 = vmatmul.mubr.msk.bf16.vlgmr.msra.gmra.mrb[8].mxu1 %vm489_vm3, %v2930_v23  ;;  %v2585_v23 = vld [vmem:[%s3507_s1 + $0xb4] ss:$8 sps:$4 sm:$0xff]  }
 0x38a   : > { %2354 = vmatprep.mubr.msk.bf16.mxu1 %vm489_vm3, %v2952_v40  ;;  %1104 = vmatprep.subr.bf16.mxu0 %v2585_v23 }
 0x38b   : > { %1105 = vmatpush1.bf16.msra.mxu0 %v2583_v56 }
 0x391   : > { %2355 = vmatmul.mubr.msk.bf16.gmra.mrb[12].mxu1 %vm489_vm3, %v2952_v40  ;;  %v2588_v40 = vld [vmem:[%s3507_s1 + $0xc4] ss:$8 sps:$4 sm:$0xff]  }
 0x392   : > { %2356 = vmatprep.mubr.msk.bf16.mxu1 %vm489_vm3, %v649_v16  ;;  %1106 = vmatprep.subr.bf16.mxu0 %v2588_v40 }
 0x393   : > { %1107 = vmatpush1.bf16.msra.mxu0 %v2586_v58  ;;  %v195_v58 = vld [vmem:[#allocation2 + $0x38] sm:$0xff] }
 0x394   : > { %1108 = vmatprep.subr.bf16.mxu0 %v2591_v60 }
 0x397   : > { %1109 = vmatpush1.bf16.msra.mxu0 %v2589_v62 }
 0x398   : > { %1110 = vmatprep.subr.bf16.mxu0 %v2594_v63 }
 0x399   : > { %2357 = vmatmul.mubr.msk.bf16.gmra.mrb[16].mxu1 %vm489_vm3, %v649_v16  ;;  %v2606_v16 = vld [vmem:[%s3507_s1 + $0x124] ss:$8 sps:$4 sm:$0xff]  }
 0x39a   : > { %2358 = vmatprep.mubr.msk.bf16.mxu1 %vm489_vm3, %v650_v1 }
 0x39b   : > { %1111 = vmatpush1.bf16.msra.mxu0 %v2592_v3 }
 0x39c   : > { %1112 = vmatprep.subr.bf16.mxu0 %v2597_v5  ;;  %v196_v5 = vld [vmem:[#allocation2 + $0x40] sm:$0xff] }
 0x39f   : > { %1113 = vmatpush1.bf16.msra.mxu0 %v2595_v2 }
 0x3a0   : > { %1114 = vmatprep.subr.bf16.mxu0 %v2600_v8  ;;  %v197_v8 = vld [vmem:[#allocation2 + $0x48] sm:$0xff] }
 0x3a1   : > { %2359 = vmatmul.mubr.msk.bf16.gmra.mrb[20].mxu1 %vm489_vm3, %v650_v1  ;;  %v2604_v1 = vld [vmem:[%s3507_s1 + $0x120] ss:$8 sps:$4 sm:$0xff]  }
 0x3a3   : > { %1115 = vmatpush1.bf16.msra.mxu0 %v2598_v10 }
 0x3a4   : > { %1116 = vmatprep.subr.bf16.mxu0 %v2603_v14 }
 0x3a7   : > { %1117 = vmatpush1.bf16.msra.mxu0 %v2601_v15 }
 0x3a8   : > { %1118 = vmatprep.subr.bf16.mxu0 %v2606_v16 }
 0x3ab   : > { %1119 = vmatpush1.bf16.msra.mxu0 %v2604_v1 }
 0x3ac   : > { %1120 = vmatprep.subr.bf16.mxu0 %v2609_v9 }
 0x3af   : > { %1121 = vmatpush1.bf16.msra.mxu0 %v2607_v18  ;;  %v198_v18 = vld [vmem:[#allocation2 + $0x50] sm:$0xff] }
 0x3b0   : > { %1122 = vmatprep.subr.bf16.mxu0 %v2612_v19 }
 0x3b3   : > { %1123 = vmatpush1.bf16.msra.mxu0 %v2610_v20 }
 0x3b4   : > { %1124 = vmatprep.subr.bf16.mxu0 %v2615_v21  ;;  %v199_v21 = vld [vmem:[#allocation2 + $0x58] sm:$0xff] }
 0x3b7   : > { %1125 = vmatpush1.bf16.msra.mxu0 %v2613_v22 }
 0x45c   : > { %v793_v25 = vpop.f32.mrb[8].mxu1 }
 0x45d   : > { %v832_v26 = vmul.f32 0.17677669, %v793_v25  ;;  %v795_v31 = vpop.f32.mrb[9].mxu1  ;;  %v200_v25 = vld [vmem:[#allocation2 + $0x60] sm:$0xff] }
 0x45e   : > { %v833_v35 = vmul.f32 0.17677669, %v795_v31  ;;  %v797_v37 = vpop.f32.mrb[10].mxu1 }
 0x45f   : > { %v3104_v39 = vadd.f32 %v832_v26, %v190_v24  ;;  %v834_v41 = vmul.f32 0.17677669, %v797_v37  ;;  %v799_v43 = vpop.f32.mrb[11].mxu1 }
 0x460   : > { %v3106_v44 = vadd.f32 %v833_v35, %v191_v29  ;;  %v835_v45 = vmul.f32 0.17677669, %v799_v43 }
 0x461   : > { %v3108_v46 = vadd.f32 %v834_v41, %v192_v36  ;;  %v201_v36 = vld [vmem:[#allocation2 + $0x68] sm:$0xff] }
 0x462   : > { %v3110_v52 = vadd.f32 %v835_v45, %v193_v42  ;;  %v864_v53 = vmax.f32 %v3104_v39, %v3106_v44 }
 0x464   : > { %v803_v56 = vpop.f32.mrb[12].mxu1  ;;  %865 = vmax.xlane.f32.xlu0 %v864_v53  ;;  %v867_v23 = vmax.f32 %v3108_v46, %v3110_v52 }
 0x465   : > { %v836_v40 = vmul.f32 0.17677669, %v803_v56  ;;  %v805_v60 = vpop.f32.mrb[13].mxu1 }
 0x466   : > { %v837_v62 = vmul.f32 0.17677669, %v805_v60  ;;  %v807_v63 = vpop.f32.mrb[14].mxu1  ;;  %868 = vmax.xlane.f32.xlu1 %v867_v23 }
 0x467   : > { %v3116_v3 = vadd.f32 %v836_v40, %v194_v54  ;;  %v838_v2 = vmul.f32 0.17677669, %v807_v63  ;;  %v809_v10 = vpop.f32.mrb[15].mxu1  ;;  %v202_v54 = vld [vmem:[#allocation2 + $0x70] sm:$0xff] }
 0x468   : > { %v3118_v14 = vadd.f32 %v837_v62, %v195_v58  ;;  %v839_v15 = vmul.f32 0.17677669, %v809_v10  ;;  %v203_v58 = vld [vmem:[#allocation2 + $0x78] sm:$0xff]  ;;  %v2618_v62 = vld [vmem:[%s3507_s1 + $0x164] ss:$8 sps:$4 sm:$0xff]  }
 0x469   : > { %v3120_v16 = vadd.f32 %v838_v2, %v196_v5  ;;  %v204_v5 = vld [vmem:[#allocation2 + $0x80] sm:$0xff]  ;;  %1126 = vmatprep.subr.bf16.mxu0 %v2618_v62 }
 0x46a   : > { %v3122_v1 = vadd.f32 %v839_v15, %v197_v8  ;;  %v870_v9 = vmax.f32 %v3116_v3, %v3118_v14  ;;  %v2616_v8 = vld [vmem:[%s3507_s1 + $0x160] ss:$8 sps:$4 sm:$0xff]  }
 0x46b   : > { %1127 = vmatpush1.bf16.msra.mxu0 %v2616_v8 }
 0x46c   : > { %v813_v19 = vpop.f32.mrb[16].mxu1  ;;  %871 = vmax.xlane.f32.xlu0 %v870_v9  ;;  %v873_v29 = vmax.f32 %v3120_v16, %v3122_v1  ;;  %v205_v9 = vld [vmem:[#allocation2 + $0x88] sm:$0xff] }
 0x46d   : > { %v840_v20 = vmul.f32 0.17677669, %v813_v19  ;;  %v815_v22 = vpop.f32.mrb[17].mxu1 }
 0x46e   : > { %v841_v24 = vmul.f32 0.17677669, %v815_v22  ;;  %v817_v26 = vpop.f32.mrb[18].mxu1  ;;  %v2619_v22 = vld [vmem:[%s3507_s1 + $0x170] ss:$8 sps:$4 sm:$0xff]  }
 0x46f   : > { %v3128_v31 = vadd.f32 %v840_v20, %v198_v18  ;;  %v842_v35 = vmul.f32 0.17677669, %v817_v26  ;;  %v819_v37 = vpop.f32.mrb[19].mxu1 }
 0x470   : > { %v3130_v41 = vadd.f32 %v841_v24, %v199_v21  ;;  %v843_v42 = vmul.f32 0.17677669, %v819_v37  ;;  %874 = vmax.xlane.f32.xlu0 %v873_v29  ;;  %v2621_v24 = vld [vmem:[%s3507_s1 + $0x174] ss:$8 sps:$4 sm:$0xff]  }
 0x471   : > { %v3132_v43 = vadd.f32 %v842_v35, %v200_v25  ;;  %1128 = vmatprep.subr.bf16.mxu0 %v2621_v24  ;;  %v2624_v35 = vld [vmem:[%s3507_s1 + $0x184] ss:$8 sps:$4 sm:$0xff]   ;;  %v2627_v37 = vld [vmem:[%s3507_s1 + $0x194] ss:$8 sps:$4 sm:$0xff]  }
 0x472   : > { %v3134_v45 = vadd.f32 %v843_v42, %v201_v36  ;;  %v876_v53 = vmax.f32 %v3128_v31, %v3130_v41  ;;  %1129 = vmatpush1.bf16.msra.mxu0 %v2619_v22  ;;  %v2622_v36 = vld [vmem:[%s3507_s1 + $0x180] ss:$8 sps:$4 sm:$0xff]   ;;  %v2625_v42 = vld [vmem:[%s3507_s1 + $0x190] ss:$8 sps:$4 sm:$0xff]  }
 0x473   : > { %1130 = vmatprep.subr.bf16.mxu0 %v2624_v35 }
 0x474   : > { %v823_v56 = vpop.f32.mrb[20].mxu1  ;;  %877 = vmax.xlane.f32.xlu1 %v876_v53  ;;  %v879_v23 = vmax.f32 %v3132_v43, %v3134_v45  ;;  %v2630_v53 = vld [vmem:[%s3507_s1 + $0x1a4] ss:$8 sps:$4 sm:$0xff]  }
 0x475   : > { %v844_v40 = vmul.f32 0.17677669, %v823_v56  ;;  %v825_v60 = vpop.f32.mrb[21].mxu1 }
 0x476   : > { %v845_v63 = vmul.f32 0.17677669, %v825_v60  ;;  %v827_v2 = vpop.f32.mrb[22].mxu1  ;;  %880 = vmax.xlane.f32.xlu0 %v879_v23  ;;  %1131 = vmatpush1.bf16.msra.mxu0 %v2622_v36 }
 0x477   : > { %v3146_v10 = vadd.f32 %v844_v40, %v202_v54  ;;  %v846_v15 = vmul.f32 0.17677669, %v827_v2  ;;  %v829_v18 = vpop.f32.mrb[23].mxu1  ;;  %1132 = vmatprep.subr.bf16.mxu0 %v2627_v37  ;;  %v2628_v54 = vld [vmem:[%s3507_s1 + $0x1a0] ss:$8 sps:$4 sm:$0xff]  }
 0x478   : > { %v3148_v19 = vadd.f32 %v845_v63, %v203_v58  ;;  %v847_v20 = vmul.f32 0.17677669, %v829_v18 }
 0x479   : > { %v3150_v21 = vadd.f32 %v846_v15, %v204_v5 }
 0x47a   : > { %v3158_v25 = vadd.f32 %v847_v20, %v205_v9  ;;  %v882_v26 = vmax.f32 %v3146_v10, %v3148_v19  ;;  %1133 = vmatpush1.bf16.msra.mxu0 %v2625_v42 }
 0x47b   : > { %1134 = vmatprep.subr.bf16.mxu0 %v2630_v53 }
 0x47c   : > { %883 = vmax.xlane.f32.xlu1 %v882_v26  ;;  %v885_v29 = vmax.f32 %v3150_v21, %v3158_v25 }
 0x47e   : > { %886 = vmax.xlane.f32.xlu0 %v885_v29  ;;  %1135 = vmatpush1.bf16.msra.mxu0 %v2628_v54 }
 0x48d   : > { %1281 = vrot.lane.b32.xlu1 %v2944_v33, %s2786_s18 }
 0x491   : > { %1283 = vrot.lane.b32.xlu1 %v2935_v28, %s2786_s18 }
 0x494   : > { %1265 = vrot.lane.b32.xlu0 %v2942_v32, %s2786_s18 }
 0x495   : > { %1267 = vrot.lane.b32.xlu1 %v2933_v27, %s2786_s18 }
 0x498   : > { %1285 = vrot.lane.b32.xlu0 %v2976_v12, %s2786_s18 }
 0x499   : > { %1269 = vrot.lane.b32.xlu1 %v2974_v11, %s2786_s18 }
 0x49c   : > { %1287 = vrot.lane.b32.xlu0 %v2970_v7, %s2786_s18 }
 0x49d   : > { %1271 = vrot.lane.b32.xlu1 %v2968_v6, %s2786_s18 }
 0x4a0   : > { %1289 = vrot.lane.b32.xlu0 %v2949_v38, %s2786_s18 }
 0x4a1   : > { %1273 = vrot.lane.b32.xlu1 %v2946_v34, %s2786_s18 }
 0x4a4   : > { %1291 = vrot.lane.b32.xlu0 %v2958_v48, %s2786_s18 }
 0x4a5   : > { %1275 = vrot.lane.b32.xlu1 %v2938_v30, %s2786_s18 }
 0x4a8   : > { %1293 = vrot.lane.b32.xlu0 %v2981_v0, %s2786_s18 }
 0x4a9   : > { %1277 = vrot.lane.b32.xlu1 %v2978_v13, %s2786_s18 }
 0x4ac   : > { %1295 = vrot.lane.b32.xlu0 %v2990_v17, %s2786_s18 }
 0x4ad   : > { %1279 = vrot.lane.b32.xlu1 %v2983_v4, %s2786_s18 }
 0x4f1   : > { %v866_v27 = vpop.xlane.xlu0 %865 }
 0x4f2   : > { %v888_v28 = vsub.f32 %v3104_v39, %v866_v27  ;;  %v889_v32 = vsub.f32 %v3106_v44, %v866_v27 }
 0x4f3   : > { %v869_v33 = vpop.xlane.xlu1 %868 }
 0x4f4   : > { %v904_v38 = vmul.f32 1.442695, %v888_v28  ;;  %v890_v34 = vsub.f32 %v3108_v46, %v869_v33  ;;  %v891_v48 = vsub.f32 %v3110_v52, %v869_v33  ;;  %v906_v30 = vmul.f32 1.442695, %v889_v32 }
 0x4f6   : > { %v908_v6 = vmul.f32 1.442695, %v890_v34  ;;  %v910_v7 = vmul.f32 1.442695, %v891_v48  ;;  %2645 = vpow2.f32 %v904_v38 }
 0x4f8   : > { %2647 = vpow2.f32 %v908_v6 }
 0x4f9   : > { %2649 = vpow2.f32 %v910_v7  ;;  %v872_v11 = vpop.xlane.xlu0 %871 }
 0x4fa   : > { %2651 = vpow2.f32 %v906_v30  ;;  %v892_v12 = vsub.f32 %v3116_v3, %v872_v11  ;;  %v893_v13 = vsub.f32 %v3118_v14, %v872_v11 }
 0x4fc   : > { %v912_v0 = vmul.f32 1.442695, %v892_v12  ;;  %v914_v4 = vmul.f32 1.442695, %v893_v13 }
 0x4fd   : > { %v875_v17 = vpop.xlane.xlu0 %874 }
 0x4fe   : > { %v894_v39 = vsub.f32 %v3120_v16, %v875_v17  ;;  %v895_v44 = vsub.f32 %v3122_v1, %v875_v17  ;;  %2653 = vpow2.f32 %v912_v0 }
 0x4ff   : > { %2655 = vpow2.f32 %v914_v4 }
 0x500   : > { %v916_v46 = vmul.f32 1.442695, %v894_v39  ;;  %v918_v52 = vmul.f32 1.442695, %v895_v44  ;;  %v3206_v56 = vpop.eup %2645 }
 0x501   : > { %v878_v23 = vpop.xlane.xlu1 %877 }
 0x502   : > { %v3208_v40 = vpop.eup %2647  ;;  %2657 = vpow2.f32 %v916_v46  ;;  %v897_v3 = vsub.f32 %v3130_v41, %v878_v23  ;;  %v896_v58 = vsub.f32 %v3128_v31, %v878_v23 }
 0x503   : > { %v3211_v14 = vpop.eup %2649  ;;  %2659 = vpow2.f32 %v918_v52  ;;  %v881_v16 = vpop.xlane.xlu0 %880  ;;  %v936_v5 = vpack.c.bf16 %v3208_v40, %v3206_v56 }
 0x504   : > { %v3214_v60 = vpop.eup %2651  ;;  %v922_v1 = vmul.f32 1.442695, %v897_v3  ;;  %v898_v62 = vsub.f32 %v3132_v43, %v881_v16  ;;  %v899_v63 = vsub.f32 %v3134_v45, %v881_v16  ;;  %v920_v15 = vmul.f32 1.442695, %v896_v58 }
 0x505   : > { %v937_v2 = vpack.c.bf16 %v3211_v14, %v3214_v60 }
 0x506   : > { %v924_v41 = vmul.f32 1.442695, %v898_v62  ;;  %v926_v8 = vmul.f32 1.442695, %v899_v63  ;;  %2661 = vpow2.f32 %v922_v1  ;;  %v2631_v1 = vld [vmem:[%s3507_s1 + $0x1d0] ss:$8 sps:$4 sm:$0xff]  }
 0x507   : > { %1136 = vmatprep.mubr.bf16.mxu0 %v937_v2  ;;  %2472 = vmatprep.subr.bf16.mxu0 %v2631_v1 }
 0x508   : > { %1137 = vmatmul.mubr.bf16.vlgmr.msra.gmra.mrb[16].mxu0 %v936_v5  ;;  %2663 = vpow2.f32 %v926_v8  ;;  %v3222_v9 = vpop.eup %2653 }
 0x509   : > { %v884_v31 = vpop.xlane.xlu1 %883  ;;  %2665 = vpow2.f32 %v924_v41  ;;  %v3225_v45 = vpop.eup %2655  ;;  %2473 = vmatpush3.bf16.msra.mxu0 %v2631_v1 }
 0x50a   : > { %v901_v43 = vsub.f32 %v3148_v19, %v884_v31  ;;  %2667 = vpow2.f32 %v920_v15  ;;  %v900_v22 = vsub.f32 %v3146_v10, %v884_v31 }
 0x50b   : > { %v887_v18 = vpop.xlane.xlu0 %886 }
 0x50c   : > { %v3227_v20 = vpop.eup %2657  ;;  %v930_v24 = vmul.f32 1.442695, %v901_v43  ;;  %v902_v26 = vsub.f32 %v3150_v21, %v887_v18  ;;  %v903_v29 = vsub.f32 %v3158_v25, %v887_v18  ;;  %v928_v27 = vmul.f32 1.442695, %v900_v22 }
 0x50d   : > { %v3232_v35 = vpop.eup %2659  ;;  %v1282_v36 = vpop.permute.xlu1 %1281  ;;  %v938_v37 = vpack.c.bf16 %v3227_v20, %v3222_v9 }
 0x50e   : > { %v932_v19 = vmul.f32 1.442695, %v902_v26  ;;  %v934_v42 = vmul.f32 1.442695, %v903_v29  ;;  %2360 = vmatprep.subr.bf16.mxu1 %v1282_v36  ;;  %v939_v53 = vpack.c.bf16 %v3232_v35, %v3225_v45  ;;  %2669 = vpow2.f32 %v930_v24 }
 0x50f   : > { %v1266_v54 = vpop.permute.xlu0 %1265 }
 0x510   : > { %1146 = vmatprep.mubr.bf16.mxu0 %v939_v53  ;;  %2361 = vmatpush3.bf16.msra.mxu1 %v1266_v54  ;;  %2671 = vpow2.f32 %v934_v42  ;;  %v3238_v21 = vpop.eup %2661 }
 0x511   : > { %1147 = vmatmul.mubr.bf16.gmra.mrb[20].mxu0 %v938_v37  ;;  %v1284_v10 = vpop.permute.xlu1 %1283  ;;  %2673 = vpow2.f32 %v932_v19 }
 0x512   : > { %2362 = vmatprep.subr.bf16.mxu1 %v1284_v10  ;;  %v3240_v25 = vpop.eup %2663  ;;  %2675 = vpow2.f32 %v928_v27 }
 0x513   : > { %v1286_v28 = vpop.permute.xlu0 %1285  ;;  %v3242_v32 = vpop.eup %2665  ;;  %v941_v33 = vpack.c.bf16 %v3240_v25, %v3238_v21 }
 0x514   : > { %v3246_v38 = vpop.eup %2667 }
 0x515   : > { %v1268_v34 = vpop.permute.xlu1 %1267  ;;  %1156 = vmatprep.mubr.bf16.mxu0 %v941_v33  ;;  %v940_v30 = vpack.c.bf16 %v3242_v32, %v3246_v38 }
 0x516   : > { %2363 = vmatpush3.bf16.msra.mxu1 %v1268_v34 }
 0x517   : > { %2364 = vmatprep.subr.bf16.mxu1 %v1286_v28  ;;  %v1288_v48 = vpop.permute.xlu0 %1287 }
 0x518   : > { %v3250_v7 = vpop.eup %2669 }
 0x519   : > { %1157 = vmatmul.mubr.bf16.gmra.mrb[24].mxu0 %v940_v30  ;;  %v1270_v6 = vpop.permute.xlu1 %1269 }
 0x51a   : > { %2365 = vmatpush3.bf16.msra.mxu1 %v1270_v6  ;;  %v3252_v11 = vpop.eup %2671 }
 0x51b   : > { %2366 = vmatprep.subr.bf16.mxu1 %v1288_v48  ;;  %v1290_v12 = vpop.permute.xlu0 %1289  ;;  %v3254_v13 = vpop.eup %2673  ;;  %v943_v0 = vpack.c.bf16 %v3252_v11, %v3250_v7 }
 0x51c   : > { %v3258_v17 = vpop.eup %2675 }
 0x51d   : > { %v1272_v4 = vpop.permute.xlu1 %1271  ;;  %1166 = vmatprep.mubr.bf16.mxu0 %v943_v0  ;;  %v942_v44 = vpack.c.bf16 %v3254_v13, %v3258_v17 }
 0x51e   : > { %2367 = vmatpush3.bf16.msra.mxu1 %v1272_v4 }
 0x51f   : > { %2368 = vmatprep.subr.bf16.mxu1 %v1290_v12  ;;  %v1292_v39 = vpop.permute.xlu0 %1291 }
 0x521   : > { %1167 = vmatmul.mubr.bf16.gmra.mrb[28].mxu0 %v942_v44  ;;  %v1274_v46 = vpop.permute.xlu1 %1273 }
 0x522   : > { %2369 = vmatpush3.bf16.msra.mxu1 %v1274_v46 }
 0x523   : > { %2370 = vmatprep.subr.bf16.mxu1 %v1292_v39  ;;  %v1294_v52 = vpop.permute.xlu0 %1293 }
 0x525   : > { %v1276_v23 = vpop.permute.xlu1 %1275 }
 0x526   : > { %2371 = vmatpush3.bf16.msra.mxu1 %v1276_v23 }
 0x527   : > { %2372 = vmatprep.subr.bf16.mxu1 %v1294_v52  ;;  %v1296_v58 = vpop.permute.xlu0 %1295 }
 0x529   : > { %v1278_v3 = vpop.permute.xlu1 %1277 }
 0x52a   : > { %2373 = vmatpush3.bf16.msra.mxu1 %v1278_v3 }
 0x52b   : > { %2374 = vmatprep.subr.bf16.mxu1 %v1296_v58 }
 0x52d   : > { %v1280_v16 = vpop.permute.xlu1 %1279 }
 0x52e   : > { %2375 = vmatpush3.bf16.msra.mxu1 %v1280_v16 }
 0x5db   : > { %v1138_v62 = vpop.f32.mrb[16].mxu0 }
 0x5dc   : > { %2677 = vrcp.f32 %v1138_v62  ;;  %v1140_v63 = vpop.f32.mrb[17].mxu0 }
 0x5dd   : > { %2679 = vrcp.f32 %v1140_v63  ;;  %v1142_v5 = vpop.f32.mrb[18].mxu0 }
 0x5de   : > { %2681 = vrcp.f32 %v1142_v5  ;;  %v1144_v2 = vpop.f32.mrb[19].mxu0 }
 0x5df   : > { %2683 = vrcp.f32 %v1144_v2 }
 0x5e4   : > { %v1148_v41 = vpop.f32.mrb[20].mxu0 }
 0x5e5   : > { %2685 = vrcp.f32 %v1148_v41  ;;  %v1150_v8 = vpop.f32.mrb[21].mxu0 }
 0x5e6   : > { %v2678_v15 = vpop.eup %2677  ;;  %2687 = vrcp.f32 %v1150_v8  ;;  %v1152_v31 = vpop.f32.mrb[22].mxu0 }
 0x5e7   : > { %v2680_v43 = vpop.eup %2679  ;;  %v1193_v18 = vmul.f32 %v2678_v15, %v1138_v62  ;;  %2689 = vrcp.f32 %v1152_v31  ;;  %v1154_v22 = vpop.f32.mrb[23].mxu0 }
 0x5e8   : > { %v2682_v24 = vpop.eup %2681  ;;  %v1194_v26 = vmul.f32 %v2680_v43, %v1140_v63  ;;  %2691 = vrcp.f32 %v1154_v22 }
 0x5e9   : > { %v2684_v29 = vpop.eup %2683  ;;  %v1209_v36 = vsub.f32 2.0, %v1193_v18  ;;  %v1195_v37 = vmul.f32 %v2682_v24, %v1142_v5 }
 0x5ea   : > { %v1210_v19 = vsub.f32 2.0, %v1194_v26  ;;  %v1196_v42 = vmul.f32 %v2684_v29, %v1144_v2 }
 0x5eb   : > { %v1225_v53 = vmul.f32 %v2678_v15, %v1209_v36  ;;  %v1211_v54 = vsub.f32 2.0, %v1195_v37 }
 0x5ec   : > { %v1226_v27 = vmul.f32 %v2680_v43, %v1210_v19  ;;  %v1212_v10 = vsub.f32 2.0, %v1196_v42  ;;  %v1158_v28 = vpop.f32.mrb[24].mxu0 }
 0x5ed   : > { %v1227_v33 = vmul.f32 %v2682_v24, %v1211_v54  ;;  %2693 = vrcp.f32 %v1158_v28  ;;  %v1160_v34 = vpop.f32.mrb[25].mxu0  ;;  %v1241_v12 = vmul.f32 %v3206_v56, %v1225_v53 }
 0x5ee   : > { %v1228_v48 = vmul.f32 %v2684_v29, %v1212_v10  ;;  %2695 = vrcp.f32 %v1160_v34  ;;  %v1162_v30 = vpop.f32.mrb[26].mxu0  ;;  %v1242_v46 = vmul.f32 %v3214_v60, %v1226_v27 }
 0x5ef   : > { %v2686_v6 = vpop.eup %2685  ;;  %v1243_v0 = vmul.f32 %v3208_v40, %v1227_v33  ;;  %2697 = vrcp.f32 %v1162_v30  ;;  %v1164_v4 = vpop.f32.mrb[27].mxu0 }
 0x5f0   : > { %v2688_v39 = vpop.eup %2687  ;;  %v1197_v44 = vmul.f32 %v2686_v6, %v1148_v41  ;;  %2699 = vrcp.f32 %v1164_v4  ;;  %v1244_v52 = vmul.f32 %v3211_v14, %v1228_v48 }
 0x5f1   : > { %v2690_v23 = vpop.eup %2689  ;;  %v1257_v3 = vpack.c.bf16 %v1243_v0, %v1241_v12  ;;  %v1198_v58 = vmul.f32 %v2688_v39, %v1150_v8 }
 0x5f2   : > { %v2692_v16 = vpop.eup %2691  ;;  %v1213_v1 = vsub.f32 2.0, %v1197_v44  ;;  %v1199_v62 = vmul.f32 %v2690_v23, %v1152_v31  ;;  %v1258_v63 = vpack.c.bf16 %v1244_v52, %v1242_v46 }
 0x5f3   : > { %v1214_v5 = vsub.f32 2.0, %v1198_v58  ;;  %v1200_v56 = vmul.f32 %v2692_v16, %v1154_v22 }
 0x5f4   : > { %v1229_v2 = vmul.f32 %v2686_v6, %v1213_v1  ;;  %v1215_v40 = vsub.f32 2.0, %v1199_v62  ;;  %1345 = vmatprep.mubr.bf16.mxu1 %v1258_v63  ;;  %v1168_v15 = vpop.f32.mrb[28].mxu0 }
 0x5f5   : > { %v1230_v43 = vmul.f32 %v2688_v39, %v1214_v5  ;;  %v1216_v41 = vsub.f32 2.0, %v1200_v56  ;;  %2701 = vrcp.f32 %v1168_v15  ;;  %1346 = vmatmul.mubr.bf16.vlgmr.msra.gmra.mrb[24].mxu1 %v1257_v3  ;;  %v1170_v60 = vpop.f32.mrb[29].mxu0 }
 0x5f6   : > { %v1231_v18 = vmul.f32 %v2690_v23, %v1215_v40  ;;  %2703 = vrcp.f32 %v1170_v60  ;;  %v1172_v14 = vpop.f32.mrb[30].mxu0  ;;  %v1245_v22 = vmul.f32 %v3222_v9, %v1229_v2 }
 0x5f7   : > { %v2694_v24 = vpop.eup %2693  ;;  %v1232_v8 = vmul.f32 %v2692_v16, %v1216_v41  ;;  %2705 = vrcp.f32 %v1172_v14  ;;  %v1174_v26 = vpop.f32.mrb[31].mxu0  ;;  %v1246_v42 = vmul.f32 %v3225_v45, %v1230_v43 }
 0x5f8   : > { %v2696_v31 = vpop.eup %2695  ;;  %v1201_v29 = vmul.f32 %v2694_v24, %v1158_v28  ;;  %2707 = vrcp.f32 %v1174_v26  ;;  %v1247_v36 = vmul.f32 %v3227_v20, %v1231_v18 }
 0x5f9   : > { %v2698_v37 = vpop.eup %2697  ;;  %v1202_v19 = vmul.f32 %v2696_v31, %v1160_v34  ;;  %v1248_v53 = vmul.f32 %v3232_v35, %v1232_v8 }
 0x5fa   : > { %v2700_v54 = vpop.eup %2699  ;;  %v1217_v27 = vsub.f32 2.0, %v1201_v29  ;;  %v1203_v10 = vmul.f32 %v2698_v37, %v1162_v30  ;;  %v1259_v33 = vpack.c.bf16 %v1247_v36, %v1245_v22 }
 0x5fb   : > { %v1218_v48 = vsub.f32 2.0, %v1202_v19  ;;  %v1204_v6 = vmul.f32 %v2700_v54, %v1164_v4  ;;  %v1260_v12 = vpack.c.bf16 %v1248_v53, %v1246_v42 }
 0x5fc   : > { %v1233_v0 = vmul.f32 %v2694_v24, %v1217_v27  ;;  %v1219_v28 = vsub.f32 2.0, %v1203_v10  ;;  %v2632_v24 = vld [vmem:[%s3507_s1 + $0x1e0] ss:$8 sps:$4 sm:$0xff]  }
 0x5fd   : > { %v1234_v39 = vmul.f32 %v2696_v31, %v1218_v48  ;;  %v1220_v44 = vsub.f32 2.0, %v1204_v6  ;;  %1353 = vmatprep.mubr.bf16.mxu1 %v1260_v12  ;;  %2474 = vmatprep.subr.bf16.mxu0 %v2632_v24 }
 0x5fe   : > { %v1235_v9 = vmul.f32 %v2698_v37, %v1219_v28  ;;  %1354 = vmatmul.mubr.bf16.gmra.mrb[28].mxu1 %v1259_v33  ;;  %v1249_v35 = vmul.f32 %v3246_v38, %v1233_v0  ;;  %2475 = vmatpush3.bf16.msra.mxu0 %v2632_v24 }
 0x5ff   : > { %v2702_v20 = vpop.eup %2701  ;;  %v1236_v34 = vmul.f32 %v2700_v54, %v1220_v44  ;;  %v1250_v4 = vmul.f32 %v3238_v21, %v1234_v39 }
 0x600   : > { %v2704_v46 = vpop.eup %2703  ;;  %v1205_v45 = vmul.f32 %v2702_v20, %v1168_v15  ;;  %v1251_v52 = vmul.f32 %v3242_v32, %v1235_v9 }
 0x601   : > { %v2706_v30 = vpop.eup %2705  ;;  %v1206_v23 = vmul.f32 %v2704_v46, %v1170_v60  ;;  %v1252_v3 = vmul.f32 %v3240_v25, %v1236_v34 }
 0x602   : > { %v2708_v58 = vpop.eup %2707  ;;  %v1221_v16 = vsub.f32 2.0, %v1205_v45  ;;  %v1207_v1 = vmul.f32 %v2706_v30, %v1172_v14  ;;  %v1261_v62 = vpack.c.bf16 %v1251_v52, %v1249_v35 }
 0x603   : > { %v1222_v63 = vsub.f32 2.0, %v1206_v23  ;;  %v1208_v5 = vmul.f32 %v2708_v58, %v1174_v26  ;;  %v1262_v56 = vpack.c.bf16 %v1252_v3, %v1250_v4 }
 0x604   : > { %v1237_v2 = vmul.f32 %v2702_v20, %v1221_v16  ;;  %v1223_v40 = vsub.f32 2.0, %v1207_v1 }
 0x605   : > { %v1238_v15 = vmul.f32 %v2704_v46, %v1222_v63  ;;  %v1224_v43 = vsub.f32 2.0, %v1208_v5  ;;  %1361 = vmatprep.mubr.bf16.mxu1 %v1262_v56  ;;  %v466_v46 = vld [vmem:[#allocation2 + $0x91] ss:$0 sm:$0xff] }
 0x606   : > { %v1239_v38 = vmul.f32 %v2706_v30, %v1223_v40  ;;  %1362 = vmatmul.mubr.bf16.gmra.mrb[32].mxu1 %v1261_v62  ;;  %v1253_v41 = vmul.f32 %v3258_v17, %v1237_v2 }
 0x607   : > { %v1240_v32 = vmul.f32 %v2708_v58, %v1224_v43  ;;  %v1254_v25 = vmul.f32 %v3250_v7, %v1238_v15 }
 0x608   : > { %v1255_v21 = vmul.f32 %v3254_v13, %v1239_v38 }
 0x609   : > { %v1256_v60 = vmul.f32 %v3252_v11, %v1240_v32 }
 0x60a   : > { %v1263_v18 = vpack.c.bf16 %v1255_v21, %v1253_v41 }
 0x60b   : > { %v1264_v14 = vpack.c.bf16 %v1256_v60, %v1254_v25 }
 0x60d   : > { %1369 = vmatprep.mubr.bf16.mxu1 %v1264_v14 }
 0x60e   : > { %1370 = vmatmul.mubr.bf16.gmra.mrb[36].mxu1 %v1263_v18 }
 0x6c8   : > { %v2376_v8 = vpop.f32.mrb[24].mxu1 }
 0x6c9   : > { %v2377_v26 = vpop.f32.mrb[25].mxu1 }
 0x6ca   : > { %v2378_v31 = vadd.f32 %v2377_v26, %v2376_v8  ;;  %v2379_v17 = vpop.f32.mrb[26].mxu1 }
 0x6cb   : > { %v2380_v29 = vpop.f32.mrb[27].mxu1 }
 0x6cc   : > { %v2381_v13 = vadd.f32 %v2380_v29, %v2379_v17 }
 0x6ce   : > { %v1378_v22 = vpack.c.bf16 %v2381_v13, %v2378_v31 }
 0x6d0   : > { %2476 = vmatprep.mubr.msk.bf16.mxu0 %vm489_vm3, %v1378_v22 }
 0x6d1   : > { %v2382_v7 = vpop.f32.mrb[28].mxu1 }
 0x6d2   : > { %v2383_v11 = vpop.f32.mrb[29].mxu1 }
 0x6d3   : > { %v2384_v36 = vadd.f32 %v2383_v11, %v2382_v7  ;;  %v2385_v37 = vpop.f32.mrb[30].mxu1 }
 0x6d4   : > { %v2386_v19 = vpop.f32.mrb[31].mxu1 }
 0x6d5   : > { %v2387_v42 = vadd.f32 %v2386_v19, %v2385_v37 }
 0x6d7   : > { %v1379_v53 = vpack.c.bf16 %v2387_v42, %v2384_v36 }
 0x6d9   : > { %v2388_v54 = vpop.f32.mrb[32].mxu1  ;;  %2477 = vmatmul.mubr.msk.bf16.vlgmr.msra.gmra.mrb[32].mxu0 %vm489_vm3, %v1379_v53 }
 0x6da   : > { %v2389_v27 = vpop.f32.mrb[33].mxu1 }
 0x6db   : > { %v2390_v10 = vadd.f32 %v2389_v27, %v2388_v54  ;;  %v2391_v33 = vpop.f32.mrb[34].mxu1 }
 0x6dc   : > { %v2392_v48 = vpop.f32.mrb[35].mxu1 }
 0x6dd   : > { %v2393_v6 = vadd.f32 %v2392_v48, %v2391_v33 }
 0x6df   : > { %v1380_v12 = vpack.c.bf16 %v2393_v6, %v2390_v10 }
 0x6e1   : > { %v2394_v0 = vpop.f32.mrb[36].mxu1  ;;  %2480 = vmatprep.mubr.msk.bf16.mxu0 %vm489_vm3, %v1380_v12 }
 0x6e2   : > { %v2395_v28 = vpop.f32.mrb[37].mxu1 }
 0x6e3   : > { %v2396_v39 = vadd.f32 %v2395_v28, %v2394_v0  ;;  %v2397_v44 = vpop.f32.mrb[38].mxu1 }
 0x6e4   : > { %v2398_v9 = vpop.f32.mrb[39].mxu1 }
 0x6e5   : > { %v2399_v20 = vadd.f32 %v2398_v9, %v2397_v44 }
 0x6e7   : > { %v1381_v34 = vpack.c.bf16 %v2399_v20, %v2396_v39 }
 0x6e9   : > { %2481 = vmatmul.mubr.msk.bf16.gmra.mrb[36].mxu0 %vm489_vm3, %v1381_v34 }
 0x7ac   : > { %v2478_v45 = vpop.f32.mrb[32].mxu0 }
 0x7ad   : > { %v1440_v35 = vpop.f32.mrb[33].mxu0  ;;  %v1449_v52 = vadd.f32 %v2478_v45, %v466_v46 }
 0x7ae   : > { %v1441_v30 = vadd.f32 %v1440_v35, %v466_v46  ;;  %v2479_v23 = vpop.f32.mrb[34].mxu0 }
 0x7af   : > { %v1443_v4 = vpop.f32.mrb[35].mxu0  ;;  %v1452_v16 = vadd.f32 %v2479_v23, %v466_v46  ;;  %v1473_v63 = vadd.f32 %v1449_v52, %v2900_v51 }
 0x7b0   : > { %v1444_v3 = vadd.f32 %v1443_v4, %v466_v46  ;;  %v1471_v58 = vadd.f32 %v1441_v30, %v2896_v49 }
 0x7b1   : > { %v1485_v56 = vsel %vm489_vm3, %v1473_v63, 0.0  ;;  %v1474_v2 = vadd.f32 %v1452_v16, %v2894_v47  ;;  %v2633_v16 = vld [vmem:[%s3507_s1 + $0x1f0] ss:$8 sps:$4 sm:$0xff]  }
 0x7b2   : > { %v1479_v1 = vsel %vm489_vm3, %v1471_v58, 0.0  ;;  %v1472_v62 = vadd.f32 %v1444_v3, %v2898_v50  ;;  %2484 = vmatprep.subr.bf16.mxu0 %v2633_v16 }
 0x7b3   : > { %1480 = vadd.xlane.f32.xlu0 %v1479_v1  ;;  %v1488_v40 = vsel %vm489_vm3, %v1474_v2, 0.0  ;;  %2485 = vmatpush3.bf16.msra.mxu0 %v2633_v16  ;;  %v2634_v1 = vld [vmem:[%s3507_s1 + $0x200] ss:$8 sps:$4 sm:$0xff]  }
 0x7b4   : > { %v1482_v5 = vsel %vm489_vm3, %v1472_v62, 0.0  ;;  %2486 = vmatprep.subr.bf16.mxu0 %v2634_v1 }
 0x7b5   : > { %1483 = vadd.xlane.f32.xlu1 %v1482_v5 }
 0x7b7   : > { %1486 = vadd.xlane.f32.xlu0 %v1485_v56  ;;  %2487 = vmatpush3.bf16.msra.mxu0 %v2634_v1 }
 0x7bb   : > { %1489 = vadd.xlane.f32.xlu0 %v1488_v40 }
 0x7bc   : > { %v2482_v49 = vpop.f32.mrb[36].mxu0 }
 0x7bd   : > { %v1456_v15 = vpop.f32.mrb[37].mxu0  ;;  %v1465_v43 = vadd.f32 %v2482_v49, %v466_v46 }
 0x7be   : > { %v1457_v38 = vadd.f32 %v1456_v15, %v466_v46  ;;  %v2483_v32 = vpop.f32.mrb[38].mxu0 }
 0x7bf   : > { %v1459_v50 = vpop.f32.mrb[39].mxu0  ;;  %v1468_v41 = vadd.f32 %v2483_v32, %v466_v46  ;;  %v1477_v47 = vadd.f32 %v1465_v43, %v2907_v55 }
 0x7c0   : > { %v1460_v51 = vadd.f32 %v1459_v50, %v466_v46  ;;  %v1475_v21 = vadd.f32 %v1457_v38, %v2910_v57 }
 0x7c1   : > { %v1478_v14 = vadd.f32 %v1468_v41, %v2912_v59  ;;  %v1497_v24 = vsel %vm489_vm3, %v1477_v47, 0.0 }
 0x7c2   : > { %v1491_v25 = vsel %vm489_vm3, %v1475_v21, 0.0  ;;  %v1476_v60 = vadd.f32 %v1460_v51, %v2914_v61 }
 0x7c3   : > { %1492 = vadd.xlane.f32.xlu1 %v1491_v25  ;;  %v1500_v8 = vsel %vm489_vm3, %v1478_v14, 0.0  ;;  %v469_v25 = vld [vmem:[#allocation2 + $0x94] ss:$0 sm:$0xff] }
 0x7c4   : > { %v1494_v18 = vsel %vm489_vm3, %v1476_v60, 0.0 }
 0x7c5   : > { %1495 = vadd.xlane.f32.xlu0 %v1494_v18 }
 0x7c7   : > { %1498 = vadd.xlane.f32.xlu1 %v1497_v24 }
 0x7c9   : > { %1501 = vadd.xlane.f32.xlu0 %v1500_v8 }
 0x840   : > { %v1481_v26 = vpop.xlane.xlu0 %1480 }
 0x841   : > { %v1503_v57 = vmul.f32 0.03125, %v1481_v26 }
 0x842   : > { %v1484_v31 = vpop.xlane.xlu1 %1483 }
 0x843   : > { %v3304_v17 = vsub.f32 %v1471_v58, %v1503_v57  ;;  %v1504_v61 = vmul.f32 0.03125, %v1484_v31  ;;  %v470_v31 = vld [vmem:[#allocation2 + $0x95] ss:$0 sm:$0xff] }
 0x844   : > { %v1487_v29 = vpop.xlane.xlu0 %1486 }
 0x845   : > { %v3306_v55 = vsub.f32 %v1472_v62, %v1504_v61  ;;  %v1505_v13 = vmul.f32 0.03125, %v1487_v29  ;;  %v1519_v59 = vmul.f32 %v3304_v17, %v3304_v17  ;;  %v2635_v62 = vld [vmem:[%s3507_s1 + $0x210] ss:$8 sps:$4 sm:$0xff]  }
 0x846   : > { %2496 = vmatprep.subr.bf16.mxu1 %v2635_v62 }
 0x847   : > { %v3310_v22 = vsub.f32 %v1473_v63, %v1505_v13  ;;  %v1527_v7 = vsel %vm489_vm3, %v1519_v59, 0.0  ;;  %v1520_v11 = vmul.f32 %v3306_v55, %v3306_v55  ;;  %v2636_v63 = vld [vmem:[%s3507_s1 + $0x220] ss:$8 sps:$4 sm:$0xff]   ;;  %2497 = vmatpush3.bf16.msra.mxu1 %v2635_v62 }
 0x848   : > { %1528 = vadd.xlane.f32.xlu1 %v1527_v7  ;;  %v1490_v36 = vpop.xlane.xlu0 %1489  ;;  %2498 = vmatprep.subr.bf16.mxu1 %v2636_v63 }
 0x849   : > { %v1506_v37 = vmul.f32 0.03125, %v1490_v36  ;;  %v1530_v19 = vsel %vm489_vm3, %v1520_v11, 0.0  ;;  %v1521_v42 = vmul.f32 %v3310_v22, %v3310_v22 }
 0x84a   : > { %1531 = vadd.xlane.f32.xlu0 %v1530_v19 }
 0x84b   : > { %v3318_v53 = vsub.f32 %v1474_v2, %v1506_v37  ;;  %v1533_v54 = vsel %vm489_vm3, %v1521_v42, 0.0  ;;  %2499 = vmatpush3.bf16.msra.mxu1 %v2636_v63  ;;  %v2638_v63 = vld [vmem:[%s3507_s1 + $0x240] ss:$8 sps:$4 sm:$0xff]  }
 0x84c   : > { %1534 = vadd.xlane.f32.xlu1 %v1533_v54 }
 0x84d   : > { %v1522_v27 = vmul.f32 %v3318_v53, %v3318_v53 }
 0x84f   : > { %v1536_v10 = vsel %vm489_vm3, %v1522_v27, 0.0 }
 0x850   : > { %v1493_v33 = vpop.xlane.xlu1 %1492  ;;  %1537 = vadd.xlane.f32.xlu0 %v1536_v10 }
 0x851   : > { %v1507_v48 = vmul.f32 0.03125, %v1493_v33 }
 0x852   : > { %v1496_v6 = vpop.xlane.xlu0 %1495 }
 0x853   : > { %v3324_v12 = vsub.f32 %v1475_v21, %v1507_v48  ;;  %v1508_v0 = vmul.f32 0.03125, %v1496_v6 }
 0x854   : > { %v1499_v28 = vpop.xlane.xlu1 %1498 }
 0x855   : > { %v3326_v39 = vsub.f32 %v1476_v60, %v1508_v0  ;;  %v1509_v44 = vmul.f32 0.03125, %v1499_v28  ;;  %v1523_v9 = vmul.f32 %v3324_v12, %v3324_v12 }
 0x856   : > { %v1502_v20 = vpop.xlane.xlu0 %1501 }
 0x857   : > { %v3330_v34 = vsub.f32 %v1477_v47, %v1509_v44  ;;  %v1510_v46 = vmul.f32 0.03125, %v1502_v20  ;;  %v1539_v45 = vsel %vm489_vm3, %v1523_v9, 0.0  ;;  %v1524_v35 = vmul.f32 %v3326_v39, %v3326_v39 }
 0x858   : > { %1540 = vadd.xlane.f32.xlu1 %v1539_v45 }
 0x859   : > { %v3335_v52 = vsub.f32 %v1478_v14, %v1510_v46  ;;  %v1542_v30 = vsel %vm489_vm3, %v1524_v35, 0.0  ;;  %v1525_v23 = vmul.f32 %v3330_v34, %v3330_v34 }
 0x85a   : > { %1543 = vadd.xlane.f32.xlu0 %v1542_v30 }
 0x85b   : > { %v1545_v4 = vsel %vm489_vm3, %v1525_v23, 0.0  ;;  %v1526_v3 = vmul.f32 %v3335_v52, %v3335_v52 }
 0x85c   : > { %1546 = vadd.xlane.f32.xlu1 %v1545_v4 }
 0x85d   : > { %v1548_v58 = vsel %vm489_vm3, %v1526_v3, 0.0 }
 0x85e   : > { %1549 = vadd.xlane.f32.xlu0 %v1548_v58 }
 0x8d5   : > { %v1529_v5 = vpop.xlane.xlu1 %1528 }
 0x8d6   : > { %v1551_v56 = vmul.f32 0.03125, %v1529_v5  ;;  %v467_v5 = vld [vmem:[#allocation2 + $0x92] ss:$0 sm:$0xff] }
 0x8d7   : > { %v1532_v2 = vpop.xlane.xlu0 %1531 }
 0x8d8   : > { %v1559_v40 = vadd.f32 1e-05, %v1551_v56  ;;  %v1552_v49 = vmul.f32 0.03125, %v1532_v2 }
 0x8d9   : > { %v1535_v15 = vpop.xlane.xlu1 %1534 }
 0x8da   : > { %2709 = vrsqrt.f32 %v1559_v40  ;;  %v1560_v43 = vadd.f32 1e-05, %v1552_v49  ;;  %v1553_v38 = vmul.f32 0.03125, %v1535_v15 }
 0x8dc   : > { %2711 = vrsqrt.f32 %v1560_v43  ;;  %v1561_v32 = vadd.f32 1e-05, %v1553_v38 }
 0x8dd   : > { %v1538_v50 = vpop.xlane.xlu0 %1537 }
 0x8de   : > { %2713 = vrsqrt.f32 %v1561_v32  ;;  %v1554_v41 = vmul.f32 0.03125, %v1538_v50 }
 0x8e0   : > { %v1562_v51 = vadd.f32 1e-05, %v1554_v41 }
 0x8e2   : > { %2715 = vrsqrt.f32 %v1562_v51 }
 0x8e4   : > { %v2710_v21 = vpop.eup %2709 }
 0x8e5   : > { %v1575_v60 = vmul.f32 %v2710_v21, %v3304_v17  ;;  %v1541_v47 = vpop.xlane.xlu1 %1540 }
 0x8e6   : > { %v2712_v18 = vpop.eup %2711  ;;  %v1555_v14 = vmul.f32 0.03125, %v1541_v47 }
 0x8e7   : > { %v1576_v24 = vmul.f32 %v2712_v18, %v3306_v55  ;;  %v1544_v8 = vpop.xlane.xlu0 %1543  ;;  %v1583_v26 = vmul.f32 %v1575_v60, %v469_v25 }
 0x8e8   : > { %v2714_v57 = vpop.eup %2713  ;;  %v1563_v61 = vadd.f32 1e-05, %v1555_v14  ;;  %v1556_v29 = vmul.f32 0.03125, %v1544_v8 }
 0x8e9   : > { %v1577_v13 = vmul.f32 %v2714_v57, %v3310_v22  ;;  %v1547_v59 = vpop.xlane.xlu1 %1546  ;;  %v1584_v7 = vmul.f32 %v1576_v24, %v469_v25  ;;  %v3359_v17 = vadd.f32 %v1583_v26, %v470_v31 }
 0x8ea   : > { %2717 = vrsqrt.f32 %v1563_v61  ;;  %v1564_v11 = vadd.f32 1e-05, %v1556_v29  ;;  %v1557_v36 = vmul.f32 0.03125, %v1547_v59 }
 0x8eb   : > { %v1550_v37 = vpop.xlane.xlu0 %1549  ;;  %v3361_v19 = vadd.f32 %v1584_v7, %v470_v31  ;;  %v1585_v27 = vmul.f32 %v1577_v13, %v469_v25 }
 0x8ec   : > { %v2716_v42 = vpop.eup %2715  ;;  %2719 = vrsqrt.f32 %v1564_v11  ;;  %v1565_v55 = vadd.f32 1e-05, %v1557_v36  ;;  %v1558_v54 = vmul.f32 0.03125, %v1550_v37  ;;  %v468_v36 = vld [vmem:[#allocation2 + $0x93] ss:$0 sm:$0xff] }
 0x8ed   : > { %v1578_v10 = vmul.f32 %v2716_v42, %v3318_v53  ;;  %v1599_v22 = vpack.c.bf16 %v3361_v19, %v3359_v17  ;;  %v3367_v6 = vadd.f32 %v1585_v27, %v470_v31 }
 0x8ee   : > { %2721 = vrsqrt.f32 %v1565_v55  ;;  %v1566_v33 = vadd.f32 1e-05, %v1558_v54 }
 0x8ef   : > { %v1586_v48 = vmul.f32 %v1578_v10, %v469_v25  ;;  %2488 = vmatprep.mubr.msk.bf16.mxu0 %vm489_vm3, %v1599_v22 }
 0x8f0   : > { %2723 = vrsqrt.f32 %v1566_v33 }
 0x8f1   : > { %v3369_v0 = vadd.f32 %v1586_v48, %v470_v31 }
 0x8f3   : > { %v1600_v28 = vpack.c.bf16 %v3369_v0, %v3367_v6 }
 0x8f4   : > { %v2718_v44 = vpop.eup %2717 }
 0x8f5   : > { %v1579_v9 = vmul.f32 %v2718_v44, %v3324_v12  ;;  %2489 = vmatmul.mubr.msk.bf16.vlgmr.msra.gmra.mrb[40].mxu0 %vm489_vm3, %v1600_v28 }
 0x8f6   : > { %v2720_v53 = vpop.eup %2719 }
 0x8f7   : > { %v1580_v20 = vmul.f32 %v2720_v53, %v3326_v39  ;;  %v1587_v46 = vmul.f32 %v1579_v9, %v469_v25 }
 0x8f8   : > { %v2722_v45 = vpop.eup %2721 }
 0x8f9   : > { %v1581_v35 = vmul.f32 %v2722_v45, %v3330_v34  ;;  %v1588_v30 = vmul.f32 %v1580_v20, %v469_v25  ;;  %v3378_v3 = vadd.f32 %v1587_v46, %v470_v31 }
 0x8fa   : > { %v2724_v23 = vpop.eup %2723 }
 0x8fb   : > { %v1582_v4 = vmul.f32 %v2724_v23, %v3335_v52  ;;  %v3380_v58 = vadd.f32 %v1588_v30, %v470_v31  ;;  %v1589_v16 = vmul.f32 %v1581_v35, %v469_v25  ;;  %v2637_v52 = vld [vmem:[%s3507_s1 + $0x230] ss:$8 sps:$4 sm:$0xff]  }
 0x8fc   : > { %2500 = vmatprep.subr.bf16.mxu1 %v2637_v52 }
 0x8fd   : > { %v1601_v12 = vpack.c.bf16 %v3380_v58, %v3378_v3  ;;  %v1590_v1 = vmul.f32 %v1582_v4, %v469_v25  ;;  %v3385_v39 = vadd.f32 %v1589_v16, %v470_v31  ;;  %2501 = vmatpush3.bf16.msra.mxu1 %v2637_v52 }
 0x8fe   : > { %2502 = vmatprep.subr.bf16.mxu1 %v2638_v63 }
 0x8ff   : > { %2492 = vmatprep.mubr.msk.bf16.mxu0 %vm489_vm3, %v1601_v12  ;;  %v3387_v62 = vadd.f32 %v1590_v1, %v470_v31 }
 0x901   : > { %v1602_v34 = vpack.c.bf16 %v3387_v62, %v3385_v39  ;;  %2503 = vmatpush3.bf16.msra.mxu1 %v2638_v63 }
 0x903   : > { %2493 = vmatmul.mubr.msk.bf16.gmra.mrb[44].mxu0 %vm489_vm3, %v1602_v34 }
 0x9c8   : > { %v2490_v56 = vpop.f32.mrb[40].mxu0 }
 0x9c9   : > { %v1670_v2 = vadd.f32 %v2490_v56, %v467_v5  ;;  %v1661_v40 = vpop.f32.mrb[41].mxu0 }
 0x9ca   : > { %v1662_v49 = vadd.f32 %v1661_v40, %v467_v5  ;;  %v2491_v15 = vpop.f32.mrb[42].mxu0 }
 0x9cb   : > { %v1673_v43 = vadd.f32 %v2491_v15, %v467_v5  ;;  %v1664_v38 = vpop.f32.mrb[43].mxu0  ;;  %v1694_v50 = vmax.f32 %v1670_v2, 0.0 }
 0x9cc   : > { %v1665_v32 = vadd.f32 %v1664_v38, %v467_v5  ;;  %v1692_v51 = vmax.f32 %v1662_v49, 0.0 }
 0x9cd   : > { %v1695_v41 = vmax.f32 %v1673_v43, 0.0 }
 0x9ce   : > { %v1693_v21 = vmax.f32 %v1665_v32, 0.0 }
 0x9cf   : > { %v1701_v25 = vpack.c.bf16 %v1695_v41, %v1694_v50 }
 0x9d0   : > { %v1700_v60 = vpack.c.bf16 %v1693_v21, %v1692_v51 }
 0x9d2   : > { %2504 = vmatprep.mubr.msk.bf16.mxu1 %vm367_vm2, %v1700_v60 }
 0x9d3   : > { %2505 = vmatmul.mubr.msk.bf16.vlgmr.msra.gmra.mrb[40].mxu1 %vm367_vm2, %v1701_v25 }
 0x9d6   : > { %v2494_v47 = vpop.f32.mrb[44].mxu0 }
 0x9d7   : > { %v1686_v18 = vadd.f32 %v2494_v47, %v467_v5  ;;  %v1677_v14 = vpop.f32.mrb[45].mxu0 }
 0x9d8   : > { %v1678_v24 = vadd.f32 %v1677_v14, %v467_v5  ;;  %v2495_v8 = vpop.f32.mrb[46].mxu0 }
 0x9d9   : > { %v1689_v26 = vadd.f32 %v2495_v8, %v467_v5  ;;  %v1680_v57 = vpop.f32.mrb[47].mxu0  ;;  %v1698_v61 = vmax.f32 %v1686_v18, 0.0 }
 0x9da   : > { %v1681_v31 = vadd.f32 %v1680_v57, %v467_v5  ;;  %v1696_v13 = vmax.f32 %v1678_v24, 0.0 }
 0x9db   : > { %v1699_v29 = vmax.f32 %v1689_v26, 0.0 }
 0x9dc   : > { %v1697_v59 = vmax.f32 %v1681_v31, 0.0 }
 0x9dd   : > { %v1703_v7 = vpack.c.bf16 %v1699_v29, %v1698_v61 }
 0x9de   : > { %v1702_v11 = vpack.c.bf16 %v1697_v59, %v1696_v13 }
 0x9e0   : > { %2508 = vmatprep.mubr.msk.bf16.mxu1 %vm367_vm2, %v1702_v11 }
 0x9e1   : > { %2509 = vmatmul.mubr.msk.bf16.gmra.mrb[44].mxu1 %vm367_vm2, %v1703_v7 }
 0xaa6   : > { %v2506_v37 = vpop.f32.mrb[40].mxu1 }
 0xaa7   : > { %v1774_v42 = vpop.f32.mrb[41].mxu1  ;;  %v1783_v55 = vadd.f32 %v2506_v37, %v468_v36 }
 0xaa8   : > { %v1775_v54 = vadd.f32 %v1774_v42, %v468_v36  ;;  %v2507_v27 = vpop.f32.mrb[42].mxu1 }
 0xaa9   : > { %v1777_v10 = vpop.f32.mrb[43].mxu1  ;;  %v1786_v22 = vadd.f32 %v2507_v27, %v468_v36  ;;  %v1807_v9 = vadd.f32 %v1783_v55, %v3367_v6 }
 0xaaa   : > { %v1778_v33 = vadd.f32 %v1777_v10, %v468_v36  ;;  %v1805_v48 = vadd.f32 %v1775_v54, %v3359_v17 }
 0xaab   : > { %v1808_v20 = vadd.f32 %v1786_v22, %v3369_v0  ;;  %v1819_v46 = vsel %vm489_vm3, %v1807_v9, 0.0 }
 0xaac   : > { %v1813_v28 = vsel %vm489_vm3, %v1805_v48, 0.0  ;;  %v1806_v44 = vadd.f32 %v1778_v33, %v3361_v19 }
 0xaad   : > { %1814 = vadd.xlane.f32.xlu1 %v1813_v28  ;;  %v1822_v45 = vsel %vm489_vm3, %v1808_v20, 0.0  ;;  %v3465_v28 = vld [vmem:[%s3507_s1 + $0x90] ss:$8 sps:$4 sm:$0xff]  }
 0xaae   : > { %v1816_v53 = vsel %vm489_vm3, %v1806_v44, 0.0  ;;  %2540 = vmatprep.subr.bf16.mxu1 %v3465_v28 }
 0xaaf   : > { %1817 = vadd.xlane.f32.xlu0 %v1816_v53  ;;  %2542 = vmatpush3.bf16.msra.mxu1 %v3465_v28 }
 0xab1   : > { %1820 = vadd.xlane.f32.xlu1 %v1819_v46 }
 0xab3   : > { %1823 = vadd.xlane.f32.xlu0 %v1822_v45 }
 0xab4   : > { %v2510_v35 = vpop.f32.mrb[44].mxu1 }
 0xab5   : > { %v1790_v17 = vpop.f32.mrb[45].mxu1  ;;  %v1799_v30 = vadd.f32 %v2510_v35, %v468_v36 }
 0xab6   : > { %v1791_v23 = vadd.f32 %v1790_v17, %v468_v36  ;;  %v2511_v4 = vpop.f32.mrb[46].mxu1 }
 0xab7   : > { %v1793_v19 = vpop.f32.mrb[47].mxu1  ;;  %v1802_v16 = vadd.f32 %v2511_v4, %v468_v36  ;;  %v1811_v34 = vadd.f32 %v1799_v30, %v3385_v39 }
 0xab8   : > { %v1794_v6 = vadd.f32 %v1793_v19, %v468_v36  ;;  %v1809_v12 = vadd.f32 %v1791_v23, %v3378_v3 }
 0xab9   : > { %v1812_v63 = vadd.f32 %v1802_v16, %v3387_v62  ;;  %v1831_v5 = vsel %vm489_vm3, %v1811_v34, 0.0 }
 0xaba   : > { %v1825_v1 = vsel %vm489_vm3, %v1809_v12, 0.0  ;;  %v1810_v0 = vadd.f32 %v1794_v6, %v3380_v58 }
 0xabb   : > { %1826 = vadd.xlane.f32.xlu1 %v1825_v1  ;;  %v1834_v56 = vsel %vm489_vm3, %v1812_v63, 0.0  ;;  %v471_v1 = vld [vmem:[#allocation2 + $0x96] ss:$0 sm:$0xff] }
 0xabc   : > { %v1828_v52 = vsel %vm489_vm3, %v1810_v0, 0.0 }
 0xabd   : > { %1829 = vadd.xlane.f32.xlu0 %v1828_v52 }
 0xabf   : > { %1832 = vadd.xlane.f32.xlu1 %v1831_v5 }
 0xac1   : > { %1835 = vadd.xlane.f32.xlu0 %v1834_v56 }
 0xb3a   : > { %v1815_v2 = vpop.xlane.xlu1 %1814 }
 0xb3b   : > { %v1837_v3 = vmul.f32 0.03125, %v1815_v2 }
 0xb3c   : > { %v1818_v40 = vpop.xlane.xlu0 %1817 }
 0xb3d   : > { %v3418_v49 = vsub.f32 %v1805_v48, %v1837_v3  ;;  %v1838_v58 = vmul.f32 0.03125, %v1818_v40  ;;  %v2639_v48 = vld [vmem:[%s3507_s1 + $0x50] ss:$8 sps:$4 sm:$0xff]  }
 0xb3e   : > { %v1821_v15 = vpop.xlane.xlu1 %1820  ;;  %2520 = vmatprep.mubr.msk.bf16.mxu0 %vm367_vm2, %v2639_v48 }
 0xb3f   : > { %v3420_v39 = vsub.f32 %v1806_v44, %v1838_v58  ;;  %v1839_v43 = vmul.f32 0.03125, %v1821_v15  ;;  %v1853_v62 = vmul.f32 %v3418_v49, %v3418_v49 }
 0xb40   : > { %v1824_v38 = vpop.xlane.xlu0 %1823 }
 0xb41   : > { %v3424_v32 = vsub.f32 %v1807_v9, %v1839_v43  ;;  %v1840_v50 = vmul.f32 0.03125, %v1824_v38  ;;  %v1861_v41 = vsel %vm489_vm3, %v1853_v62, 0.0  ;;  %v1854_v51 = vmul.f32 %v3420_v39, %v3420_v39  ;;  %v472_v43 = vld [vmem:[#allocation2 + $0x97] ss:$0 sm:$0xff] }
 0xb42   : > { %1862 = vadd.xlane.f32.xlu1 %v1861_v41 }
 0xb43   : > { %v3429_v21 = vsub.f32 %v1808_v20, %v1840_v50  ;;  %v1864_v25 = vsel %vm489_vm3, %v1854_v51, 0.0  ;;  %v1855_v60 = vmul.f32 %v3424_v32, %v3424_v32 }
 0xb44   : > { %1865 = vadd.xlane.f32.xlu0 %v1864_v25 }
 0xb45   : > { %v1867_v47 = vsel %vm489_vm3, %v1855_v60, 0.0  ;;  %v1856_v18 = vmul.f32 %v3429_v21, %v3429_v21 }
 0xb46   : > { %1868 = vadd.xlane.f32.xlu1 %v1867_v47 }
 0xb47   : > { %v1870_v14 = vsel %vm489_vm3, %v1856_v18, 0.0 }
 0xb48   : > { %v1827_v24 = vpop.xlane.xlu1 %1826  ;;  %1871 = vadd.xlane.f32.xlu0 %v1870_v14 }
 0xb49   : > { %v1841_v8 = vmul.f32 0.03125, %v1827_v24 }
 0xb4a   : > { %v1830_v26 = vpop.xlane.xlu0 %1829 }
 0xb4b   : > { %v3438_v57 = vsub.f32 %v1809_v12, %v1841_v8  ;;  %v1842_v31 = vmul.f32 0.03125, %v1830_v26 }
 0xb4c   : > { %v1833_v61 = vpop.xlane.xlu1 %1832 }
 0xb4d   : > { %v3440_v29 = vsub.f32 %v1810_v0, %v1842_v31  ;;  %v1843_v13 = vmul.f32 0.03125, %v1833_v61  ;;  %v1857_v59 = vmul.f32 %v3438_v57, %v3438_v57 }
 0xb4e   : > { %v1836_v7 = vpop.xlane.xlu0 %1835 }
 0xb4f   : > { %v3444_v11 = vsub.f32 %v1811_v34, %v1843_v13  ;;  %v1844_v36 = vmul.f32 0.03125, %v1836_v7  ;;  %v1873_v37 = vsel %vm489_vm3, %v1857_v59, 0.0  ;;  %v1858_v42 = vmul.f32 %v3440_v29, %v3440_v29 }
 0xb50   : > { %1874 = vadd.xlane.f32.xlu1 %v1873_v37 }
 0xb51   : > { %v3449_v55 = vsub.f32 %v1812_v63, %v1844_v36  ;;  %v1876_v54 = vsel %vm489_vm3, %v1858_v42, 0.0  ;;  %v1859_v27 = vmul.f32 %v3444_v11, %v3444_v11 }
 0xb52   : > { %1877 = vadd.xlane.f32.xlu0 %v1876_v54 }
 0xb53   : > { %v1879_v10 = vsel %vm489_vm3, %v1859_v27, 0.0  ;;  %v1860_v22 = vmul.f32 %v3449_v55, %v3449_v55 }
 0xb54   : > { %1880 = vadd.xlane.f32.xlu1 %v1879_v10 }
 0xb55   : > { %v1882_v33 = vsel %vm489_vm3, %v1860_v22, 0.0 }
 0xb56   : > { %1883 = vadd.xlane.f32.xlu0 %v1882_v33 }
 0xbcf   : > { %v1863_v44 = vpop.xlane.xlu1 %1862 }
 0xbd0   : > { %v1885_v9 = vmul.f32 0.03125, %v1863_v44 }
 0xbd1   : > { %v1866_v53 = vpop.xlane.xlu0 %1865 }
 0xbd2   : > { %v1893_v20 = vadd.f32 1e-05, %v1885_v9  ;;  %v1886_v46 = vmul.f32 0.03125, %v1866_v53  ;;  %v2644_v53 = vld [vmem:[%s3507_s1 + $0xa0] ss:$8 sps:$4 sm:$0xff]  }
 0xbd3   : > { %v1869_v45 = vpop.xlane.xlu1 %1868  ;;  %2541 = vmatprep.subr.bf16.mxu1 %v2644_v53 }
 0xbd4   : > { %2725 = vrsqrt.f32 %v1893_v20  ;;  %v1894_v35 = vadd.f32 1e-05, %v1886_v46  ;;  %v1887_v17 = vmul.f32 0.03125, %v1869_v45  ;;  %2543 = vmatpush3.bf16.msra.mxu1 %v2644_v53 }
 0xbd5   : > { %v1872_v30 = vpop.xlane.xlu0 %1871 }
 0xbd6   : > { %2727 = vrsqrt.f32 %v1894_v35  ;;  %v1895_v23 = vadd.f32 1e-05, %v1887_v17  ;;  %v1888_v4 = vmul.f32 0.03125, %v1872_v30 }
 0xbd8   : > { %2729 = vrsqrt.f32 %v1895_v23  ;;  %v1896_v19 = vadd.f32 1e-05, %v1888_v4 }
 0xbda   : > { %2731 = vrsqrt.f32 %v1896_v19 }
 0xbdd   : > { %v1875_v16 = vpop.xlane.xlu1 %1874 }
 0xbde   : > { %v2726_v6 = vpop.eup %2725  ;;  %v1889_v12 = vmul.f32 0.03125, %v1875_v16 }
 0xbdf   : > { %v1878_v0 = vpop.xlane.xlu0 %1877  ;;  %v1909_v34 = vmul.f32 %v2726_v6, %v3418_v49 }
 0xbe0   : > { %v2728_v52 = vpop.eup %2727  ;;  %v1897_v63 = vadd.f32 1e-05, %v1889_v12  ;;  %v1890_v5 = vmul.f32 0.03125, %v1878_v0  ;;  %v2050_v12 = vld [vmem:[#allocation2 + $0x1] ss:$0 sm:$0xff] }
 0xbe1   : > { %v1881_v56 = vpop.xlane.xlu1 %1880  ;;  %v1910_v2 = vmul.f32 %v2728_v52, %v3420_v39  ;;  %v1917_v3 = vmul.f32 %v1909_v34, %v471_v1 }
 0xbe2   : > { %v2730_v40 = vpop.eup %2729  ;;  %2733 = vrsqrt.f32 %v1897_v63  ;;  %v1898_v58 = vadd.f32 1e-05, %v1890_v5  ;;  %v1891_v15 = vmul.f32 0.03125, %v1881_v56 }
 0xbe3   : > { %v1884_v62 = vpop.xlane.xlu0 %1883  ;;  %v1918_v38 = vmul.f32 %v1910_v2, %v471_v1  ;;  %v1911_v50 = vmul.f32 %v2730_v40, %v3424_v32  ;;  %v1925_v25 = vadd.f32 %v1917_v3, %v472_v43 }
 0xbe4   : > { %v2732_v41 = vpop.eup %2731  ;;  %2735 = vrsqrt.f32 %v1898_v58  ;;  %v1899_v51 = vadd.f32 1e-05, %v1891_v15  ;;  %v1892_v49 = vmul.f32 0.03125, %v1884_v62 }
 0xbe5   : > { %v1926_v60 = vadd.f32 %v1918_v38, %v472_v43  ;;  %v1912_v47 = vmul.f32 %v2732_v41, %v3429_v21  ;;  %v1919_v18 = vmul.f32 %v1911_v50, %v471_v1 }
 0xbe6   : > { %2737 = vrsqrt.f32 %v1899_v51  ;;  %v1900_v39 = vadd.f32 1e-05, %v1892_v49 }
 0xbe7   : > { %v1941_v14 = vpack.c.bf16 %v1926_v60, %v1925_v25  ;;  %v1920_v24 = vmul.f32 %v1912_v47, %v471_v1  ;;  %v1927_v8 = vadd.f32 %v1919_v18, %v472_v43 }
 0xbe8   : > { %2739 = vrsqrt.f32 %v1900_v39 }
 0xbe9   : > { %2512 = vmatprep.subr.bf16.mxu0 %v1941_v14  ;;  %v1928_v26 = vadd.f32 %v1920_v24, %v472_v43 }
 0xbea   : > { %2513 = vmatpush3.bf16.msra.mxu0 %v1941_v14 }
 0xbeb   : > { %v1942_v31 = vpack.c.bf16 %v1928_v26, %v1927_v8 }
 0xbec   : > { %v2734_v32 = vpop.eup %2733 }
 0xbed   : > { %2514 = vmatprep.subr.bf16.mxu0 %v1942_v31  ;;  %v1913_v61 = vmul.f32 %v2734_v32, %v3438_v57 }
 0xbee   : > { %v2736_v13 = vpop.eup %2735  ;;  %2515 = vmatpush3.bf16.msra.mxu0 %v1942_v31 }
 0xbef   : > { %v1914_v59 = vmul.f32 %v2736_v13, %v3440_v29  ;;  %v1921_v21 = vmul.f32 %v1913_v61, %v471_v1  ;;  %v2640_v29 = vld [vmem:[%s3507_s1 + $0x60] ss:$8 sps:$4 sm:$0xff]  }
 0xbf0   : > { %v2738_v7 = vpop.eup %2737 }
 0xbf1   : > { %v1922_v36 = vmul.f32 %v1914_v59, %v471_v1  ;;  %v1915_v37 = vmul.f32 %v2738_v7, %v3444_v11  ;;  %v1929_v54 = vadd.f32 %v1921_v21, %v472_v43  ;;  %v2641_v11 = vld [vmem:[%s3507_s1 + $0x70] ss:$8 sps:$4 sm:$0xff]  }
 0xbf2   : > { %v2740_v42 = vpop.eup %2739 }
 0xbf3   : > { %v1930_v27 = vadd.f32 %v1922_v36, %v472_v43  ;;  %v1916_v10 = vmul.f32 %v2740_v42, %v3449_v55  ;;  %v1923_v22 = vmul.f32 %v1915_v37, %v471_v1  ;;  %v2642_v55 = vld [vmem:[%s3507_s1 + $0x80] ss:$8 sps:$4 sm:$0xff]  }
 0xbf5   : > { %v1943_v33 = vpack.c.bf16 %v1930_v27, %v1929_v54  ;;  %v1924_v48 = vmul.f32 %v1916_v10, %v471_v1  ;;  %v1931_v44 = vadd.f32 %v1923_v22, %v472_v43 }
 0xbf7   : > { %2516 = vmatprep.subr.bf16.mxu0 %v1943_v33  ;;  %v1932_v57 = vadd.f32 %v1924_v48, %v472_v43 }
 0xbf8   : > { %2517 = vmatpush3.bf16.msra.mxu0 %v1943_v33 }
 0xbf9   : > { %v1944_v9 = vpack.c.bf16 %v1932_v57, %v1931_v44 }
 0xbfb   : > { %2518 = vmatprep.subr.bf16.mxu0 %v1944_v9 }
 0xbfc   : > { %2519 = vmatpush3.bf16.msra.mxu0 %v1944_v9 }
 0xbfd   : > { %2528 = vmatprep.subr.bf16.mxu0 %v3465_v28 }
 0xbff   : > { %2521 = vmatmul.mubr.msk.bf16.vlgmr.msra.gmra.mrb[48].mxu0 %vm367_vm2, %v2640_v29 }
 0xc00   : > { %2524 = vmatprep.mubr.msk.bf16.mxu0 %vm367_vm2, %v2641_v11  ;;  %2529 = vmatpush3.bf16.msra.mxu0 %v3465_v28 }
 0xc01   : > { %2530 = vmatprep.subr.bf16.mxu0 %v2644_v53 }
 0xc04   : > { %2531 = vmatpush3.bf16.msra.mxu0 %v2644_v53 }
 0xc07   : > { %2525 = vmatmul.mubr.msk.bf16.gmra.mrb[52].mxu0 %vm367_vm2, %v2642_v55 }
 0xcd2   : > { %v2522_v20 = vpop.f32.mrb[48].mxu0 }
 0xcd3   : > { %v2011_v46 = vpop.f32.mrb[49].mxu0 }
 0xcd4   : > { %v2523_v45 = vpop.f32.mrb[50].mxu0 }
 0xcd5   : > { %v2047_v35 = vpack.c.bf16 %v2523_v45, %v2522_v20  ;;  %v2014_v28 = vpop.f32.mrb[51].mxu0 }
 0xcd6   : > { %v2046_v17 = vpack.c.bf16 %v2014_v28, %v2011_v46 }
 0xcd8   : > { %2532 = vmatprep.mubr.msk.bf16.mxu0 %vm489_vm3, %v2046_v17 }
 0xcd9   : > { %2533 = vmatmul.mubr.msk.bf16.vlgmr.msra.gmra.mrb[56].mxu0 %vm489_vm3, %v2047_v35 }
 0xcda   : > { %v2526_v30 = vpop.f32.mrb[52].mxu0 }
 0xcdb   : > { %v2027_v23 = vpop.f32.mrb[53].mxu0 }
 0xcdc   : > { %v2527_v4 = vpop.f32.mrb[54].mxu0 }
 0xcdd   : > { %v2049_v19 = vpack.c.bf16 %v2527_v4, %v2526_v30  ;;  %v2030_v16 = vpop.f32.mrb[55].mxu0 }
 0xcde   : > { %v2048_v6 = vpack.c.bf16 %v2030_v16, %v2027_v23 }
 0xce0   : > { %2536 = vmatprep.mubr.msk.bf16.mxu1 %vm489_vm3, %v2048_v6 }
 0xce1   : > { %2537 = vmatmul.mubr.msk.bf16.vlgmr.msra.gmra.mrb[48].mxu1 %vm489_vm3, %v2049_v19 }
 0xdac   : > { %v2534_v1 = vpop.f32.mrb[56].mxu0 }
 0xdad   : > { %v2118_v0 = vadd.f32 %v2534_v1, %v2050_v12  ;;  %v2109_v34 = vpop.f32.mrb[57].mxu0 }
 0xdae   : > { %v2110_v52 = vadd.f32 %v2109_v34, %v2050_v12  ;;  %v2535_v63 = vpop.f32.mrb[58].mxu0 }
 0xdaf   : > { %2142 = vst [vmem:[%s187_s25 + $0x10] sm:$0xff] %v2118_v0  ;;  %v2121_v5 = vadd.f32 %v2535_v63, %v2050_v12  ;;  %v2112_v56 = vpop.f32.mrb[59].mxu0 }
 0xdb0   : > { %2140 = vst [vmem:[%s187_s25] sm:$0xff] %v2110_v52  ;;  %v2113_v2 = vadd.f32 %v2112_v56, %v2050_v12 }
 0xdb1   : > { %2143 = vst [vmem:[%s187_s25 + $0x18] sm:$0xff] %v2121_v5 }
 0xdb2   : > { %2141 = vst [vmem:[%s187_s25 + $0x8] sm:$0xff] %v2113_v2 }
 0xdb4   : > { %v2538_v3 = vpop.f32.mrb[48].mxu1 }
 0xdb5   : > { %v2134_v40 = vadd.f32 %v2538_v3, %v2050_v12  ;;  %v2125_v58 = vpop.f32.mrb[49].mxu1 }
 0xdb6   : > { %v2126_v15 = vadd.f32 %v2125_v58, %v2050_v12  ;;  %v2539_v43 = vpop.f32.mrb[50].mxu1 }
 0xdb7   : > { %2146 = vst [vmem:[%s187_s25 + $0x30] sm:$0xff] %v2134_v40  ;;  %v2137_v62 = vadd.f32 %v2539_v43, %v2050_v12  ;;  %v2128_v38 = vpop.f32.mrb[51].mxu1 }
 0xdb8   : > { %2144 = vst [vmem:[%s187_s25 + $0x20] sm:$0xff] %v2126_v15  ;;  %v2129_v50 = vadd.f32 %v2128_v38, %v2050_v12 }
 0xdb9   : > { %2147 = vst [vmem:[%s187_s25 + $0x38] sm:$0xff] %v2137_v62 }
 0xdba   : > { %2145 = vst [vmem:[%s187_s25 + $0x28] sm:$0xff] %v2129_v50 }
 0xdbb PF: > { %s14_s12 = sadd.s32 1, %s2779_s12  }
 0xdbc   : > { %p11_p3 = scmp.ge.s32.totalorder %s14_s12, 10  }
 0xdbe   :  { %13 = sbr.rel (!%p11_p3) target bundleno = 1 (0x1), region = 67 }
 0xdc5   :  { %2170 = vsyncpa [#allocation3], 1 }
 0xdc6   :  { %2172 = vsyncpa [#allocation3 + $0x1], 1 }

</bundles_post_ra>
